<compile_context>
chip_gen: v7x
topology: tpu7x:2x2x1
jax: 0.10.0
libtpu: 0.0.40
codegen_flags: <defaults>
</compile_context>

<pallas_src>
import functools

import jax
import jax.numpy as jnp
from jax.experimental import pallas as pl
from jax.experimental.pallas import tpu as pltpu

EPS = 1e-10                     # matches lpips.normalize_tensor eps
LANE = 128                      # lane-dense padded channel width
VMEM_LIMIT = 32 * 1024 * 1024   # explicit scoped-VMEM budget (safe on v5e/v6e/v7x)


def _row_tile(m, pref=512, mult=8):
    """Largest tile <= pref that divides m and is a multiple of `mult`.

    Falls back to the full dim (always a legal single block)."""
    if m <= pref:
        return m
    t = (pref // mult) * mult
    while t >= mult:
        if m % t == 0:
            return t
        t -= mult
    return m


# ---------------------------------------------------------------------------
# Pallas kernel 1: conv (as matmul over im2col patches) + bias + ReLU
#   bf16 MXU inputs, f32 accumulate + epilogue, lane-dense (128) output.
# ---------------------------------------------------------------------------
def _conv_mm_kernel(p_ref, w_ref, b_ref, o_ref):
    acc = jnp.dot(p_ref[...], w_ref[...], preferred_element_type=jnp.float32)
    o_ref[...] = jnp.maximum(acc + b_ref[...], 0.0)


def conv2d_relu(x_nhwc, w2d_bf16, b_row, *, k, stride, pad, cin):
    """x: (B,H,W,cin) f32, w2d: (k*k*cin, 128) bf16 (zero-padded beyond the
    real Cout), b_row: (1, 128) f32 -> (B, Ho, Wo, 128) f32 (padded ch == 0)."""
    B, H, W, _ = x_nhwc.shape
    Ho = (H + 2 * pad - k) // stride + 1
    Wo = (W + 2 * pad - k) // stride + 1

    xp = jnp.pad(x_nhwc, ((0, 0), (pad, pad), (pad, pad), (0, 0)))
    cols = []
    for di in range(k):            # static python loop -> pure glue slices
        for dj in range(k):
            cols.append(
                xp[:, di:di + stride * Ho:stride, dj:dj + stride * Wo:stride, :]
            )
    # (B, Ho, Wo, k*k*cin), column order (ki, kj, cin) matches weight reshape.
    M = B * Ho * Wo
    Kd = k * k * cin
    patches2d = (
        jnp.concatenate(cols, axis=-1).reshape(M, Kd).astype(jnp.bfloat16)
    )

    # bf16 sublane packing -> row tiles kept a multiple of 16.
    tm = _row_tile(M, pref=512, mult=16)
    grid = (M // tm,)

    out2d = pl.pallas_call(
        _conv_mm_kernel,
        out_shape=jax.ShapeDtypeStruct((M, LANE), jnp.float32),
        grid_spec=pltpu.PrefetchScalarGridSpec(
            num_scalar_prefetch=0,
            grid=grid,
            in_specs=[
                pl.BlockSpec((tm, Kd), lambda i: (i, 0)),     # patch row tile
                pl.BlockSpec((Kd, LANE), lambda i: (0, 0)),   # weights (resident)
                pl.BlockSpec((1, LANE), lambda i: (0, 0)),    # bias (resident)
            ],
            out_specs=pl.BlockSpec((tm, LANE), lambda i: (i, 0)),
        ),
        compiler_params=pltpu.CompilerParams(
            dimension_semantics=("parallel",),
            vmem_limit_bytes=VMEM_LIMIT,
        ),
    )(patches2d, w2d_bf16, b_row)
    return out2d.reshape(B, Ho, Wo, LANE)


# ---------------------------------------------------------------------------
# Pallas kernel 2: per-layer LPIPS-style distance
#   sum_b mean_{h,w} sum_c (normalize(f0) - normalize(f1))^2
#   Gridded over row tiles of the STACKED (2B) feature slab; f0 rows come from
#   the first half, f1 rows from the second half via an offset index_map.
#   SMEM scalar accumulator; lane-dense 128 channels (padded channels are
#   exactly zero -> contribute nothing to norms/diffs).
# ---------------------------------------------------------------------------
def _lpips_dist_kernel(f0_ref, f1_ref, o_ref, *, inv_hw):
    step = pl.program_id(0)

    @pl.when(step == 0)
    def _():
        o_ref[0, 0] = 0.0

    f0 = f0_ref[...]                                       # (tr, 128) f32
    f1 = f1_ref[...]
    # 1/(||f||_2 + eps) via EUP reciprocal (free slot) instead of VALU divide.
    r0 = pl.reciprocal(
        jnp.sqrt(jnp.sum(f0 * f0, axis=-1, keepdims=True)) + EPS, approx=True)
    r1 = pl.reciprocal(
        jnp.sqrt(jnp.sum(f1 * f1, axis=-1, keepdims=True)) + EPS, approx=True)
    d = (f0 * r0 - f1 * r1) ** 2
    # sum over C and over the (b,h,w) rows in this tile; /HW == spatial mean,
    # batch dimension stays summed (matches spatial_average(...).sum()).
    o_ref[0, 0] += jnp.sum(d) * inv_hw


def lpips_layer_loss(f_stacked, B):
    """f_stacked: (2B, H, W, 128) padded NHWC features (in0 rows then in1 rows)
    -> scalar layer loss."""
    BB, H, W, C = f_stacked.shape
    assert BB == 2 * B
    R = B * H * W                      # rows belonging to each of f0 / f1
    f2d = f_stacked.reshape(2 * R, C)

    tr = _row_tile(R, pref=512, mult=8)
    nt = R // tr                        # number of tiles per half

    out = pl.pallas_call(
        functools.partial(_lpips_dist_kernel, inv_hw=1.0 / float(H * W)),
        out_shape=jax.ShapeDtypeStruct((1, 1), jnp.float32),
        grid_spec=pltpu.PrefetchScalarGridSpec(
            num_scalar_prefetch=0,
            grid=(nt,),
            in_specs=[
                pl.BlockSpec((tr, C), lambda i: (i, 0)),        # f0 tile
                pl.BlockSpec((tr, C), lambda i: (i + nt, 0)),   # f1 tile (2nd half)
            ],
            out_specs=pl.BlockSpec(
                (1, 1), lambda i: (0, 0),
                memory_space=pltpu.MemorySpace.SMEM),
        ),
        compiler_params=pltpu.CompilerParams(
            dimension_semantics=("arbitrary",),   # scalar accumulator axis
            vmem_limit_bytes=VMEM_LIMIT,
        ),
    )(f2d, f2d)
    return out[0, 0]


# ---------------------------------------------------------------------------
# Synthetic deterministic 5-stage conv+ReLU trunk (stand-in for alex/vgg trunk)
# ---------------------------------------------------------------------------
# (Cin, Cout, K, stride, pad)
_TRUNK_CFG = (
    (3, 8, 3, 2, 1),    # relu1 : 16x16 -> 8x8
    (8, 16, 3, 2, 1),   # relu2 : 8x8  -> 4x4
    (16, 32, 3, 1, 1),  # relu3 : 4x4  -> 4x4
    (32, 32, 3, 1, 1),  # relu4 : 4x4  -> 4x4
    (32, 32, 3, 2, 1),  # relu5 : 4x4  -> 2x2
)


def init_trunk_params(key):
    """Returns per-layer (w2d bf16 (k*k*cin, 128), bias f32 (1, 128)).

    Output channels are zero-padded to 128 (lane-dense); padded channels get
    zero weights and zero bias, so ReLU keeps them exactly zero everywhere.
    """
    params = []
    for (cin, cout, k, _s, _p) in _TRUNK_CFG:
        key, kw, kb = jax.random.split(key, 3)
        w = 0.1 * jax.random.normal(kw, (k, k, cin, cout), jnp.float32)
        b = 0.01 * jax.random.normal(kb, (cout,), jnp.float32)
        w2d = jnp.pad(w, ((0, 0), (0, 0), (0, 0), (0, LANE - cout)))
        w2d = w2d.reshape(k * k * cin, LANE).astype(jnp.bfloat16)
        b_row = jnp.pad(b, (0, LANE - cout)).reshape(1, LANE)
        params.append((w2d, b_row))
    return params


def trunk_forward(x_nhwc, params):
    """One pass over the (stacked) batch. Returns padded-128-channel features."""
    feats = []
    h = x_nhwc                                   # real channels only
    for (w2d, b_row), (cin, cout, k, s, p) in zip(params, _TRUNK_CFG):
        f = conv2d_relu(h, w2d, b_row, k=k, stride=s, pad=p, cin=cin)
        feats.append(f)                          # (2B, Ho, Wo, 128)
        h = f[..., :cout]                        # slice back real channels
    return feats


# ---------------------------------------------------------------------------
# LayerLoss forward (all layers used, i.e. layers=None)
# ---------------------------------------------------------------------------
def layer_loss(in0_nchw, in1_nchw, params):
    B = in0_nchw.shape[0]
    # Single stacked trunk pass: (2B, C, H, W) -> NHWC.
    x = jnp.concatenate([in0_nchw, in1_nchw], axis=0)
    x = jnp.transpose(x, (0, 2, 3, 1)).astype(jnp.float32)
    feats = trunk_forward(x, params)             # 5 conv launches total
    per_layer = [lpips_layer_loss(f, B) for f in feats]
    return jnp.mean(jnp.stack(per_layer))        # torch.stack([...]).mean()


if __name__ == "__main__":
    key = jax.random.PRNGKey(0)
    k0, k1 = jax.random.split(key)
    in0 = jax.random.normal(k0, (2, 3, 16, 16), jnp.float32)
    in1 = jax.random.normal(k1, (2, 3, 16, 16), jnp.float32)

    params = init_trunk_params(jax.random.PRNGKey(123))

    fn = jax.jit(lambda a, b: layer_loss(a, b, params))
    out = fn(in0, in1)
    jax.block_until_ready(out)
    print("KERNEL_OK")
</pallas_src>

<mosaic_0001>
module attributes {stable_mosaic.version = 11 : i64} {
  func.func @_conv_mm_kernel(%arg0: i32, %arg1: memref<256x27xbf16, #tpu.memory_space<vmem>>, %arg2: memref<27x128xbf16, #tpu.memory_space<vmem>>, %arg3: memref<1x128xf32, #tpu.memory_space<vmem>>, %arg4: memref<256x128xf32, #tpu.memory_space<vmem>>) attributes {dimension_semantics = [#tpu.dimension_semantics<parallel>], iteration_bounds = array<i64: 1>, scalar_prefetch = 0 : i64, scratch_operands = 0 : i64, tpu.core_type = #tpu.core_type<tc>, window_params = [{transform_indices = @transform_0, window_bounds = array<i64: 256, 27>}, {pipeline_mode = #tpu.pipeline_mode<synchronous>, transform_indices = @transform_1, window_bounds = array<i64: 27, 128>}, {pipeline_mode = #tpu.pipeline_mode<synchronous>, transform_indices = @transform_2, window_bounds = array<i64: 1, 128>}, {transform_indices = @transform_3, window_bounds = array<i64: 256, 128>}]} {
    %c0 = arith.constant 0 : index
    %c0_0 = arith.constant 0 : index
    %0 = vector.load %arg1[%c0, %c0_0] : memref<256x27xbf16, #tpu.memory_space<vmem>>, vector<256x27xbf16>
    %c0_1 = arith.constant 0 : index
    %c0_2 = arith.constant 0 : index
    %1 = vector.load %arg2[%c0_1, %c0_2] : memref<27x128xbf16, #tpu.memory_space<vmem>>, vector<27x128xbf16>
    %cst = arith.constant dense<0.000000e+00> : vector<256x128xf32>
    %2 = tpu.matmul %0, %1, %cst {dimension_numbers = #tpu.dot_dimension_numbers<[1], [0], [0], [1], [0, 0, 1, 1], [], []>} : vector<256x27xbf16>, vector<27x128xbf16>, vector<256x128xf32> -> vector<256x128xf32>
    %c0_3 = arith.constant 0 : index
    %c0_4 = arith.constant 0 : index
    %3 = vector.load %arg3[%c0_3, %c0_4] : memref<1x128xf32, #tpu.memory_space<vmem>>, vector<1x128xf32>
    %4 = vector.broadcast %3 : vector<1x128xf32> to vector<256x128xf32>
    %5 = arith.addf %2, %4 : vector<256x128xf32>
    %cst_5 = arith.constant 0.000000e+00 : f32
    %6 = vector.broadcast %cst_5 : f32 to vector<256x128xf32>
    %7 = arith.maximumf %5, %6 : vector<256x128xf32>
    %c0_6 = arith.constant 0 : index
    %c0_7 = arith.constant 0 : index
    %8 = vector.load %arg4[%c0_6, %c0_7] : memref<256x128xf32, #tpu.memory_space<vmem>>, vector<256x128xf32>
    tpu.vector_store %arg4[%c0_6, %c0_7], %7 {strides = array<i32>} : memref<256x128xf32, #tpu.memory_space<vmem>>, vector<256x128xf32>,
    return
  }
  func.func @transform_0(%arg0: i32) -> (i32, i32) {
    %c0_i32 = arith.constant 0 : i32
    %c0_i32_0 = arith.constant 0 : i32
    return %arg0, %c0_i32 : i32, i32
  }
  func.func @transform_1(%arg0: i32) -> (i32, i32) {
    %c0_i32 = arith.constant 0 : i32
    %c0_i32_0 = arith.constant 0 : i32
    %c0_i32_1 = arith.constant 0 : i32
    return %c0_i32, %c0_i32_0 : i32, i32
  }
  func.func @transform_2(%arg0: i32) -> (i32, i32) {
    %c0_i32 = arith.constant 0 : i32
    %c0_i32_0 = arith.constant 0 : i32
    %c0_i32_1 = arith.constant 0 : i32
    return %c0_i32, %c0_i32_0 : i32, i32
  }
  func.func @transform_3(%arg0: i32) -> (i32, i32) {
    %c0_i32 = arith.constant 0 : i32
    %c0_i32_0 = arith.constant 0 : i32
    return %arg0, %c0_i32 : i32, i32
  }
}

module attributes {stable_mosaic.version = 11 : i64} {
  func.func @_lpips_dist_kernel(%arg0: i32, %arg1: memref<128x128xf32, #tpu.memory_space<vmem>>, %arg2: memref<128x128xf32, #tpu.memory_space<vmem>>, %arg3: memref<1x1xf32, #tpu.memory_space<smem>>) attributes {dimension_semantics = [#tpu.dimension_semantics<arbitrary>], iteration_bounds = array<i64: 1>, scalar_prefetch = 0 : i64, scratch_operands = 0 : i64, tpu.core_type = #tpu.core_type<tc>, window_params = [{transform_indices = @transform_0, window_bounds = array<i64: 128, 128>}, {transform_indices = @transform_1, window_bounds = array<i64: 128, 128>}, {transform_indices = @transform_2, window_bounds = array<i64: 1, 1>}]} {
    %c0_i32 = arith.constant 0 : i32
    %0 = arith.cmpi eq, %arg0, %c0_i32 : i32
    %1 = arith.extui %0 : i1 to i32
    %c0_i32_0 = arith.constant 0 : i32
    %2 = arith.cmpi ne, %1, %c0_i32_0 : i32
    scf.if %2 {
      %cst_13 = arith.constant 0.000000e+00 : f32
      %c0_14 = arith.constant 0 : index
      %c0_15 = arith.constant 0 : index
      %33 = memref.load %arg3[%c0_14, %c0_15] : memref<1x1xf32, #tpu.memory_space<smem>>
      memref.store %cst_13, %arg3[%c0_14, %c0_15] : memref<1x1xf32, #tpu.memory_space<smem>>
    } else {
    }
    %c0 = arith.constant 0 : index
    %c0_1 = arith.constant 0 : index
    %3 = vector.load %arg1[%c0, %c0_1] : memref<128x128xf32, #tpu.memory_space<vmem>>, vector<128x128xf32>
    %c0_2 = arith.constant 0 : index
    %c0_3 = arith.constant 0 : index
    %4 = vector.load %arg2[%c0_2, %c0_3] : memref<128x128xf32, #tpu.memory_space<vmem>>, vector<128x128xf32>
    %5 = arith.mulf %3, %3 : vector<128x128xf32>
    %cst = arith.constant dense<0.000000e+00> : vector<128xf32>
    %6 = vector.multi_reduction <add>, %5, %cst [1] : vector<128x128xf32> to vector<128xf32>
    %7 = vector.shape_cast %6 : vector<128xf32> to vector<128x1xf32>
    %8 = math.sqrt %7 : vector<128x1xf32>
    %cst_4 = arith.constant 1.000000e-10 : f32
    %9 = vector.broadcast %cst_4 : f32 to vector<128x1xf32>
    %10 = arith.addf %8, %9 : vector<128x1xf32>
    %11 = tpu.reciprocal %10 {approx = true} : vector<128x1xf32> -> vector<128x1xf32>
    %12 = arith.mulf %4, %4 : vector<128x128xf32>
    %cst_5 = arith.constant dense<0.000000e+00> : vector<128xf32>
    %13 = vector.multi_reduction <add>, %12, %cst_5 [1] : vector<128x128xf32> to vector<128xf32>
    %14 = vector.shape_cast %13 : vector<128xf32> to vector<128x1xf32>
    %15 = math.sqrt %14 : vector<128x1xf32>
    %cst_6 = arith.constant 1.000000e-10 : f32
    %16 = vector.broadcast %cst_6 : f32 to vector<128x1xf32>
    %17 = arith.addf %15, %16 : vector<128x1xf32>
    %18 = tpu.reciprocal %17 {approx = true} : vector<128x1xf32> -> vector<128x1xf32>
    %19 = vector.broadcast %11 : vector<128x1xf32> to vector<128x128xf32>
    %20 = arith.mulf %3, %19 : vector<128x128xf32>
    %21 = vector.broadcast %18 : vector<128x1xf32> to vector<128x128xf32>
    %22 = arith.mulf %4, %21 : vector<128x128xf32>
    %23 = arith.subf %20, %22 : vector<128x128xf32>
    %24 = arith.mulf %23, %23 : vector<128x128xf32>
    %c0_7 = arith.constant 0 : index
    %c0_8 = arith.constant 0 : index
    %25 = memref.load %arg3[%c0_7, %c0_8] : memref<1x1xf32, #tpu.memory_space<smem>>
    %26 = vector.shape_cast %24 : vector<128x128xf32> to vector<1x128x128xf32>
    %cst_9 = arith.constant dense<0.000000e+00> : vector<1xf32>
    %27 = vector.multi_reduction <add>, %26, %cst_9 [1, 2] : vector<1x128x128xf32> to vector<1xf32>
    %28 = vector.shape_cast %27 : vector<1xf32> to vector<1x1x1xf32>
    %29 = vector.extract %28[0, 0, 0] : f32 from vector<1x1x1xf32>
    %cst_10 = arith.constant 1.562500e-02 : f32
    %30 = arith.mulf %29, %cst_10 : f32
    %31 = arith.addf %25, %30 : f32
    %c0_11 = arith.constant 0 : index
    %c0_12 = arith.constant 0 : index
    %32 = memref.load %arg3[%c0_11, %c0_12] : memref<1x1xf32, #tpu.memory_space<smem>>
    memref.store %31, %arg3[%c0_11, %c0_12] : memref<1x1xf32, #tpu.memory_space<smem>>
    return
  }
  func.func @transform_0(%arg0: i32) -> (i32, i32) {
    %c0_i32 = arith.constant 0 : i32
    %c0_i32_0 = arith.constant 0 : i32
    return %arg0, %c0_i32 : i32, i32
  }
  func.func @transform_1(%arg0: i32) -> (i32, i32) {
    %c1_i32 = arith.constant 1 : i32
    %0 = arith.addi %arg0, %c1_i32 : i32
    %c0_i32 = arith.constant 0 : i32
    %c0_i32_0 = arith.constant 0 : i32
    return %0, %c0_i32 : i32, i32
  }
  func.func @transform_2(%arg0: i32) -> (i32, i32) {
    %c0_i32 = arith.constant 0 : i32
    %c0_i32_0 = arith.constant 0 : i32
    %c0_i32_1 = arith.constant 0 : i32
    return %c0_i32, %c0_i32_0 : i32, i32
  }
}

module attributes {stable_mosaic.version = 11 : i64} {
  func.func @_conv_mm_kernel(%arg0: i32, %arg1: memref<64x72xbf16, #tpu.memory_space<vmem>>, %arg2: memref<72x128xbf16, #tpu.memory_space<vmem>>, %arg3: memref<1x128xf32, #tpu.memory_space<vmem>>, %arg4: memref<64x128xf32, #tpu.memory_space<vmem>>) attributes {dimension_semantics = [#tpu.dimension_semantics<parallel>], iteration_bounds = array<i64: 1>, scalar_prefetch = 0 : i64, scratch_operands = 0 : i64, tpu.core_type = #tpu.core_type<tc>, window_params = [{transform_indices = @transform_0, window_bounds = array<i64: 64, 72>}, {pipeline_mode = #tpu.pipeline_mode<synchronous>, transform_indices = @transform_1, window_bounds = array<i64: 72, 128>}, {pipeline_mode = #tpu.pipeline_mode<synchronous>, transform_indices = @transform_2, window_bounds = array<i64: 1, 128>}, {transform_indices = @transform_3, window_bounds = array<i64: 64, 128>}]} {
    %c0 = arith.constant 0 : index
    %c0_0 = arith.constant 0 : index
    %0 = vector.load %arg1[%c0, %c0_0] : memref<64x72xbf16, #tpu.memory_space<vmem>>, vector<64x72xbf16>
    %c0_1 = arith.constant 0 : index
    %c0_2 = arith.constant 0 : index
    %1 = vector.load %arg2[%c0_1, %c0_2] : memref<72x128xbf16, #tpu.memory_space<vmem>>, vector<72x128xbf16>
    %cst = arith.constant dense<0.000000e+00> : vector<64x128xf32>
    %2 = tpu.matmul %0, %1, %cst {dimension_numbers = #tpu.dot_dimension_numbers<[1], [0], [0], [1], [0, 0, 1, 1], [], []>} : vector<64x72xbf16>, vector<72x128xbf16>, vector<64x128xf32> -> vector<64x128xf32>
    %c0_3 = arith.constant 0 : index
    %c0_4 = arith.constant 0 : index
    %3 = vector.load %arg3[%c0_3, %c0_4] : memref<1x128xf32, #tpu.memory_space<vmem>>, vector<1x128xf32>
    %4 = vector.broadcast %3 : vector<1x128xf32> to vector<64x128xf32>
    %5 = arith.addf %2, %4 : vector<64x128xf32>
    %cst_5 = arith.constant 0.000000e+00 : f32
    %6 = vector.broadcast %cst_5 : f32 to vector<64x128xf32>
    %7 = arith.maximumf %5, %6 : vector<64x128xf32>
    %c0_6 = arith.constant 0 : index
    %c0_7 = arith.constant 0 : index
    %8 = vector.load %arg4[%c0_6, %c0_7] : memref<64x128xf32, #tpu.memory_space<vmem>>, vector<64x128xf32>
    tpu.vector_store %arg4[%c0_6, %c0_7], %7 {strides = array<i32>} : memref<64x128xf32, #tpu.memory_space<vmem>>, vector<64x128xf32>,
    return
  }
  func.func @transform_0(%arg0: i32) -> (i32, i32) {
    %c0_i32 = arith.constant 0 : i32
    %c0_i32_0 = arith.constant 0 : i32
    return %arg0, %c0_i32 : i32, i32
  }
  func.func @transform_1(%arg0: i32) -> (i32, i32) {
    %c0_i32 = arith.constant 0 : i32
    %c0_i32_0 = arith.constant 0 : i32
    %c0_i32_1 = arith.constant 0 : i32
    return %c0_i32, %c0_i32_0 : i32, i32
  }
  func.func @transform_2(%arg0: i32) -> (i32, i32) {
    %c0_i32 = arith.constant 0 : i32
    %c0_i32_0 = arith.constant 0 : i32
    %c0_i32_1 = arith.constant 0 : i32
    return %c0_i32, %c0_i32_0 : i32, i32
  }
  func.func @transform_3(%arg0: i32) -> (i32, i32) {
    %c0_i32 = arith.constant 0 : i32
    %c0_i32_0 = arith.constant 0 : i32
    return %arg0, %c0_i32 : i32, i32
  }
}

module attributes {stable_mosaic.version = 11 : i64} {
  func.func @_lpips_dist_kernel(%arg0: i32, %arg1: memref<32x128xf32, #tpu.memory_space<vmem>>, %arg2: memref<32x128xf32, #tpu.memory_space<vmem>>, %arg3: memref<1x1xf32, #tpu.memory_space<smem>>) attributes {dimension_semantics = [#tpu.dimension_semantics<arbitrary>], iteration_bounds = array<i64: 1>, scalar_prefetch = 0 : i64, scratch_operands = 0 : i64, tpu.core_type = #tpu.core_type<tc>, window_params = [{transform_indices = @transform_0, window_bounds = array<i64: 32, 128>}, {transform_indices = @transform_1, window_bounds = array<i64: 32, 128>}, {transform_indices = @transform_2, window_bounds = array<i64: 1, 1>}]} {
    %c0_i32 = arith.constant 0 : i32
    %0 = arith.cmpi eq, %arg0, %c0_i32 : i32
    %1 = arith.extui %0 : i1 to i32
    %c0_i32_0 = arith.constant 0 : i32
    %2 = arith.cmpi ne, %1, %c0_i32_0 : i32
    scf.if %2 {
      %cst_13 = arith.constant 0.000000e+00 : f32
      %c0_14 = arith.constant 0 : index
      %c0_15 = arith.constant 0 : index
      %33 = memref.load %arg3[%c0_14, %c0_15] : memref<1x1xf32, #tpu.memory_space<smem>>
      memref.store %cst_13, %arg3[%c0_14, %c0_15] : memref<1x1xf32, #tpu.memory_space<smem>>
    } else {
    }
    %c0 = arith.constant 0 : index
    %c0_1 = arith.constant 0 : index
    %3 = vector.load %arg1[%c0, %c0_1] : memref<32x128xf32, #tpu.memory_space<vmem>>, vector<32x128xf32>
    %c0_2 = arith.constant 0 : index
    %c0_3 = arith.constant 0 : index
    %4 = vector.load %arg2[%c0_2, %c0_3] : memref<32x128xf32, #tpu.memory_space<vmem>>, vector<32x128xf32>
    %5 = arith.mulf %3, %3 : vector<32x128xf32>
    %cst = arith.constant dense<0.000000e+00> : vector<32xf32>
    %6 = vector.multi_reduction <add>, %5, %cst [1] : vector<32x128xf32> to vector<32xf32>
    %7 = vector.shape_cast %6 : vector<32xf32> to vector<32x1xf32>
    %8 = math.sqrt %7 : vector<32x1xf32>
    %cst_4 = arith.constant 1.000000e-10 : f32
    %9 = vector.broadcast %cst_4 : f32 to vector<32x1xf32>
    %10 = arith.addf %8, %9 : vector<32x1xf32>
    %11 = tpu.reciprocal %10 {approx = true} : vector<32x1xf32> -> vector<32x1xf32>
    %12 = arith.mulf %4, %4 : vector<32x128xf32>
    %cst_5 = arith.constant dense<0.000000e+00> : vector<32xf32>
    %13 = vector.multi_reduction <add>, %12, %cst_5 [1] : vector<32x128xf32> to vector<32xf32>
    %14 = vector.shape_cast %13 : vector<32xf32> to vector<32x1xf32>
    %15 = math.sqrt %14 : vector<32x1xf32>
    %cst_6 = arith.constant 1.000000e-10 : f32
    %16 = vector.broadcast %cst_6 : f32 to vector<32x1xf32>
    %17 = arith.addf %15, %16 : vector<32x1xf32>
    %18 = tpu.reciprocal %17 {approx = true} : vector<32x1xf32> -> vector<32x1xf32>
    %19 = vector.broadcast %11 : vector<32x1xf32> to vector<32x128xf32>
    %20 = arith.mulf %3, %19 : vector<32x128xf32>
    %21 = vector.broadcast %18 : vector<32x1xf32> to vector<32x128xf32>
    %22 = arith.mulf %4, %21 : vector<32x128xf32>
    %23 = arith.subf %20, %22 : vector<32x128xf32>
    %24 = arith.mulf %23, %23 : vector<32x128xf32>
    %c0_7 = arith.constant 0 : index
    %c0_8 = arith.constant 0 : index
    %25 = memref.load %arg3[%c0_7, %c0_8] : memref<1x1xf32, #tpu.memory_space<smem>>
    %26 = vector.shape_cast %24 : vector<32x128xf32> to vector<1x32x128xf32>
    %cst_9 = arith.constant dense<0.000000e+00> : vector<1xf32>
    %27 = vector.multi_reduction <add>, %26, %cst_9 [1, 2] : vector<1x32x128xf32> to vector<1xf32>
    %28 = vector.shape_cast %27 : vector<1xf32> to vector<1x1x1xf32>
    %29 = vector.extract %28[0, 0, 0] : f32 from vector<1x1x1xf32>
    %cst_10 = arith.constant 6.250000e-02 : f32
    %30 = arith.mulf %29, %cst_10 : f32
    %31 = arith.addf %25, %30 : f32
    %c0_11 = arith.constant 0 : index
    %c0_12 = arith.constant 0 : index
    %32 = memref.load %arg3[%c0_11, %c0_12] : memref<1x1xf32, #tpu.memory_space<smem>>
    memref.store %31, %arg3[%c0_11, %c0_12] : memref<1x1xf32, #tpu.memory_space<smem>>
    return
  }
  func.func @transform_0(%arg0: i32) -> (i32, i32) {
    %c0_i32 = arith.constant 0 : i32
    %c0_i32_0 = arith.constant 0 : i32
    return %arg0, %c0_i32 : i32, i32
  }
  func.func @transform_1(%arg0: i32) -> (i32, i32) {
    %c1_i32 = arith.constant 1 : i32
    %0 = arith.addi %arg0, %c1_i32 : i32
    %c0_i32 = arith.constant 0 : i32
    %c0_i32_0 = arith.constant 0 : i32
    return %0, %c0_i32 : i32, i32
  }
  func.func @transform_2(%arg0: i32) -> (i32, i32) {
    %c0_i32 = arith.constant 0 : i32
    %c0_i32_0 = arith.constant 0 : i32
    %c0_i32_1 = arith.constant 0 : i32
    return %c0_i32, %c0_i32_0 : i32, i32
  }
}

module attributes {stable_mosaic.version = 11 : i64} {
  func.func @_conv_mm_kernel(%arg0: i32, %arg1: memref<64x144xbf16, #tpu.memory_space<vmem>>, %arg2: memref<144x128xbf16, #tpu.memory_space<vmem>>, %arg3: memref<1x128xf32, #tpu.memory_space<vmem>>, %arg4: memref<64x128xf32, #tpu.memory_space<vmem>>) attributes {dimension_semantics = [#tpu.dimension_semantics<parallel>], iteration_bounds = array<i64: 1>, scalar_prefetch = 0 : i64, scratch_operands = 0 : i64, tpu.core_type = #tpu.core_type<tc>, window_params = [{transform_indices = @transform_0, window_bounds = array<i64: 64, 144>}, {pipeline_mode = #tpu.pipeline_mode<synchronous>, transform_indices = @transform_1, window_bounds = array<i64: 144, 128>}, {pipeline_mode = #tpu.pipeline_mode<synchronous>, transform_indices = @transform_2, window_bounds = array<i64: 1, 128>}, {transform_indices = @transform_3, window_bounds = array<i64: 64, 128>}]} {
    %c0 = arith.constant 0 : index
    %c0_0 = arith.constant 0 : index
    %0 = vector.load %arg1[%c0, %c0_0] : memref<64x144xbf16, #tpu.memory_space<vmem>>, vector<64x144xbf16>
    %c0_1 = arith.constant 0 : index
    %c0_2 = arith.constant 0 : index
    %1 = vector.load %arg2[%c0_1, %c0_2] : memref<144x128xbf16, #tpu.memory_space<vmem>>, vector<144x128xbf16>
    %cst = arith.constant dense<0.000000e+00> : vector<64x128xf32>
    %2 = tpu.matmul %0, %1, %cst {dimension_numbers = #tpu.dot_dimension_numbers<[1], [0], [0], [1], [0, 0, 1, 1], [], []>} : vector<64x144xbf16>, vector<144x128xbf16>, vector<64x128xf32> -> vector<64x128xf32>
    %c0_3 = arith.constant 0 : index
    %c0_4 = arith.constant 0 : index
    %3 = vector.load %arg3[%c0_3, %c0_4] : memref<1x128xf32, #tpu.memory_space<vmem>>, vector<1x128xf32>
    %4 = vector.broadcast %3 : vector<1x128xf32> to vector<64x128xf32>
    %5 = arith.addf %2, %4 : vector<64x128xf32>
    %cst_5 = arith.constant 0.000000e+00 : f32
    %6 = vector.broadcast %cst_5 : f32 to vector<64x128xf32>
    %7 = arith.maximumf %5, %6 : vector<64x128xf32>
    %c0_6 = arith.constant 0 : index
    %c0_7 = arith.constant 0 : index
    %8 = vector.load %arg4[%c0_6, %c0_7] : memref<64x128xf32, #tpu.memory_space<vmem>>, vector<64x128xf32>
    tpu.vector_store %arg4[%c0_6, %c0_7], %7 {strides = array<i32>} : memref<64x128xf32, #tpu.memory_space<vmem>>, vector<64x128xf32>,
    return
  }
  func.func @transform_0(%arg0: i32) -> (i32, i32) {
    %c0_i32 = arith.constant 0 : i32
    %c0_i32_0 = arith.constant 0 : i32
    return %arg0, %c0_i32 : i32, i32
  }
  func.func @transform_1(%arg0: i32) -> (i32, i32) {
    %c0_i32 = arith.constant 0 : i32
    %c0_i32_0 = arith.constant 0 : i32
    %c0_i32_1 = arith.constant 0 : i32
    return %c0_i32, %c0_i32_0 : i32, i32
  }
  func.func @transform_2(%arg0: i32) -> (i32, i32) {
    %c0_i32 = arith.constant 0 : i32
    %c0_i32_0 = arith.constant 0 : i32
    %c0_i32_1 = arith.constant 0 : i32
    return %c0_i32, %c0_i32_0 : i32, i32
  }
  func.func @transform_3(%arg0: i32) -> (i32, i32) {
    %c0_i32 = arith.constant 0 : i32
    %c0_i32_0 = arith.constant 0 : i32
    return %arg0, %c0_i32 : i32, i32
  }
}

module attributes {stable_mosaic.version = 11 : i64} {
  func.func @_conv_mm_kernel(%arg0: i32, %arg1: memref<64x288xbf16, #tpu.memory_space<vmem>>, %arg2: memref<288x128xbf16, #tpu.memory_space<vmem>>, %arg3: memref<1x128xf32, #tpu.memory_space<vmem>>, %arg4: memref<64x128xf32, #tpu.memory_space<vmem>>) attributes {dimension_semantics = [#tpu.dimension_semantics<parallel>], iteration_bounds = array<i64: 1>, scalar_prefetch = 0 : i64, scratch_operands = 0 : i64, tpu.core_type = #tpu.core_type<tc>, window_params = [{transform_indices = @transform_0, window_bounds = array<i64: 64, 288>}, {pipeline_mode = #tpu.pipeline_mode<synchronous>, transform_indices = @transform_1, window_bounds = array<i64: 288, 128>}, {pipeline_mode = #tpu.pipeline_mode<synchronous>, transform_indices = @transform_2, window_bounds = array<i64: 1, 128>}, {transform_indices = @transform_3, window_bounds = array<i64: 64, 128>}]} {
    %c0 = arith.constant 0 : index
    %c0_0 = arith.constant 0 : index
    %0 = vector.load %arg1[%c0, %c0_0] : memref<64x288xbf16, #tpu.memory_space<vmem>>, vector<64x288xbf16>
    %c0_1 = arith.constant 0 : index
    %c0_2 = arith.constant 0 : index
    %1 = vector.load %arg2[%c0_1, %c0_2] : memref<288x128xbf16, #tpu.memory_space<vmem>>, vector<288x128xbf16>
    %cst = arith.constant dense<0.000000e+00> : vector<64x128xf32>
    %2 = tpu.matmul %0, %1, %cst {dimension_numbers = #tpu.dot_dimension_numbers<[1], [0], [0], [1], [0, 0, 1, 1], [], []>} : vector<64x288xbf16>, vector<288x128xbf16>, vector<64x128xf32> -> vector<64x128xf32>
    %c0_3 = arith.constant 0 : index
    %c0_4 = arith.constant 0 : index
    %3 = vector.load %arg3[%c0_3, %c0_4] : memref<1x128xf32, #tpu.memory_space<vmem>>, vector<1x128xf32>
    %4 = vector.broadcast %3 : vector<1x128xf32> to vector<64x128xf32>
    %5 = arith.addf %2, %4 : vector<64x128xf32>
    %cst_5 = arith.constant 0.000000e+00 : f32
    %6 = vector.broadcast %cst_5 : f32 to vector<64x128xf32>
    %7 = arith.maximumf %5, %6 : vector<64x128xf32>
    %c0_6 = arith.constant 0 : index
    %c0_7 = arith.constant 0 : index
    %8 = vector.load %arg4[%c0_6, %c0_7] : memref<64x128xf32, #tpu.memory_space<vmem>>, vector<64x128xf32>
    tpu.vector_store %arg4[%c0_6, %c0_7], %7 {strides = array<i32>} : memref<64x128xf32, #tpu.memory_space<vmem>>, vector<64x128xf32>,
    return
  }
  func.func @transform_0(%arg0: i32) -> (i32, i32) {
    %c0_i32 = arith.constant 0 : i32
    %c0_i32_0 = arith.constant 0 : i32
    return %arg0, %c0_i32 : i32, i32
  }
  func.func @transform_1(%arg0: i32) -> (i32, i32) {
    %c0_i32 = arith.constant 0 : i32
    %c0_i32_0 = arith.constant 0 : i32
    %c0_i32_1 = arith.constant 0 : i32
    return %c0_i32, %c0_i32_0 : i32, i32
  }
  func.func @transform_2(%arg0: i32) -> (i32, i32) {
    %c0_i32 = arith.constant 0 : i32
    %c0_i32_0 = arith.constant 0 : i32
    %c0_i32_1 = arith.constant 0 : i32
    return %c0_i32, %c0_i32_0 : i32, i32
  }
  func.func @transform_3(%arg0: i32) -> (i32, i32) {
    %c0_i32 = arith.constant 0 : i32
    %c0_i32_0 = arith.constant 0 : i32
    return %arg0, %c0_i32 : i32, i32
  }
}

module attributes {stable_mosaic.version = 11 : i64} {
  func.func @_lpips_dist_kernel(%arg0: i32, %arg1: memref<8x128xf32, #tpu.memory_space<vmem>>, %arg2: memref<8x128xf32, #tpu.memory_space<vmem>>, %arg3: memref<1x1xf32, #tpu.memory_space<smem>>) attributes {dimension_semantics = [#tpu.dimension_semantics<arbitrary>], iteration_bounds = array<i64: 1>, scalar_prefetch = 0 : i64, scratch_operands = 0 : i64, tpu.core_type = #tpu.core_type<tc>, window_params = [{transform_indices = @transform_0, window_bounds = array<i64: 8, 128>}, {transform_indices = @transform_1, window_bounds = array<i64: 8, 128>}, {transform_indices = @transform_2, window_bounds = array<i64: 1, 1>}]} {
    %c0_i32 = arith.constant 0 : i32
    %0 = arith.cmpi eq, %arg0, %c0_i32 : i32
    %1 = arith.extui %0 : i1 to i32
    %c0_i32_0 = arith.constant 0 : i32
    %2 = arith.cmpi ne, %1, %c0_i32_0 : i32
    scf.if %2 {
      %cst_13 = arith.constant 0.000000e+00 : f32
      %c0_14 = arith.constant 0 : index
      %c0_15 = arith.constant 0 : index
      %33 = memref.load %arg3[%c0_14, %c0_15] : memref<1x1xf32, #tpu.memory_space<smem>>
      memref.store %cst_13, %arg3[%c0_14, %c0_15] : memref<1x1xf32, #tpu.memory_space<smem>>
    } else {
    }
    %c0 = arith.constant 0 : index
    %c0_1 = arith.constant 0 : index
    %3 = vector.load %arg1[%c0, %c0_1] : memref<8x128xf32, #tpu.memory_space<vmem>>, vector<8x128xf32>
    %c0_2 = arith.constant 0 : index
    %c0_3 = arith.constant 0 : index
    %4 = vector.load %arg2[%c0_2, %c0_3] : memref<8x128xf32, #tpu.memory_space<vmem>>, vector<8x128xf32>
    %5 = arith.mulf %3, %3 : vector<8x128xf32>
    %cst = arith.constant dense<0.000000e+00> : vector<8xf32>
    %6 = vector.multi_reduction <add>, %5, %cst [1] : vector<8x128xf32> to vector<8xf32>
    %7 = vector.shape_cast %6 : vector<8xf32> to vector<8x1xf32>
    %8 = math.sqrt %7 : vector<8x1xf32>
    %cst_4 = arith.constant 1.000000e-10 : f32
    %9 = vector.broadcast %cst_4 : f32 to vector<8x1xf32>
    %10 = arith.addf %8, %9 : vector<8x1xf32>
    %11 = tpu.reciprocal %10 {approx = true} : vector<8x1xf32> -> vector<8x1xf32>
    %12 = arith.mulf %4, %4 : vector<8x128xf32>
    %cst_5 = arith.constant dense<0.000000e+00> : vector<8xf32>
    %13 = vector.multi_reduction <add>, %12, %cst_5 [1] : vector<8x128xf32> to vector<8xf32>
    %14 = vector.shape_cast %13 : vector<8xf32> to vector<8x1xf32>
    %15 = math.sqrt %14 : vector<8x1xf32>
    %cst_6 = arith.constant 1.000000e-10 : f32
    %16 = vector.broadcast %cst_6 : f32 to vector<8x1xf32>
    %17 = arith.addf %15, %16 : vector<8x1xf32>
    %18 = tpu.reciprocal %17 {approx = true} : vector<8x1xf32> -> vector<8x1xf32>
    %19 = vector.broadcast %11 : vector<8x1xf32> to vector<8x128xf32>
    %20 = arith.mulf %3, %19 : vector<8x128xf32>
    %21 = vector.broadcast %18 : vector<8x1xf32> to vector<8x128xf32>
    %22 = arith.mulf %4, %21 : vector<8x128xf32>
    %23 = arith.subf %20, %22 : vector<8x128xf32>
    %24 = arith.mulf %23, %23 : vector<8x128xf32>
    %c0_7 = arith.constant 0 : index
    %c0_8 = arith.constant 0 : index
    %25 = memref.load %arg3[%c0_7, %c0_8] : memref<1x1xf32, #tpu.memory_space<smem>>
    %26 = vector.shape_cast %24 : vector<8x128xf32> to vector<1x8x128xf32>
    %cst_9 = arith.constant dense<0.000000e+00> : vector<1xf32>
    %27 = vector.multi_reduction <add>, %26, %cst_9 [1, 2] : vector<1x8x128xf32> to vector<1xf32>
    %28 = vector.shape_cast %27 : vector<1xf32> to vector<1x1x1xf32>
    %29 = vector.extract %28[0, 0, 0] : f32 from vector<1x1x1xf32>
    %cst_10 = arith.constant 2.500000e-01 : f32
    %30 = arith.mulf %29, %cst_10 : f32
    %31 = arith.addf %25, %30 : f32
    %c0_11 = arith.constant 0 : index
    %c0_12 = arith.constant 0 : index
    %32 = memref.load %arg3[%c0_11, %c0_12] : memref<1x1xf32, #tpu.memory_space<smem>>
    memref.store %31, %arg3[%c0_11, %c0_12] : memref<1x1xf32, #tpu.memory_space<smem>>
    return
  }
  func.func @transform_0(%arg0: i32) -> (i32, i32) {
    %c0_i32 = arith.constant 0 : i32
    %c0_i32_0 = arith.constant 0 : i32
    return %arg0, %c0_i32 : i32, i32
  }
  func.func @transform_1(%arg0: i32) -> (i32, i32) {
    %c1_i32 = arith.constant 1 : i32
    %0 = arith.addi %arg0, %c1_i32 : i32
    %c0_i32 = arith.constant 0 : i32
    %c0_i32_0 = arith.constant 0 : i32
    return %0, %c0_i32 : i32, i32
  }
  func.func @transform_2(%arg0: i32) -> (i32, i32) {
    %c0_i32 = arith.constant 0 : i32
    %c0_i32_0 = arith.constant 0 : i32
    %c0_i32_1 = arith.constant 0 : i32
    return %c0_i32, %c0_i32_0 : i32, i32
  }
}

module attributes {stable_mosaic.version = 11 : i64} {
  func.func @_conv_mm_kernel(%arg0: i32, %arg1: memref<16x288xbf16, #tpu.memory_space<vmem>>, %arg2: memref<288x128xbf16, #tpu.memory_space<vmem>>, %arg3: memref<1x128xf32, #tpu.memory_space<vmem>>, %arg4: memref<16x128xf32, #tpu.memory_space<vmem>>) attributes {dimension_semantics = [#tpu.dimension_semantics<parallel>], iteration_bounds = array<i64: 1>, scalar_prefetch = 0 : i64, scratch_operands = 0 : i64, tpu.core_type = #tpu.core_type<tc>, window_params = [{transform_indices = @transform_0, window_bounds = array<i64: 16, 288>}, {pipeline_mode = #tpu.pipeline_mode<synchronous>, transform_indices = @transform_1, window_bounds = array<i64: 288, 128>}, {pipeline_mode = #tpu.pipeline_mode<synchronous>, transform_indices = @transform_2, window_bounds = array<i64: 1, 128>}, {transform_indices = @transform_3, window_bounds = array<i64: 16, 128>}]} {
    %c0 = arith.constant 0 : index
    %c0_0 = arith.constant 0 : index
    %0 = vector.load %arg1[%c0, %c0_0] : memref<16x288xbf16, #tpu.memory_space<vmem>>, vector<16x288xbf16>
    %c0_1 = arith.constant 0 : index
    %c0_2 = arith.constant 0 : index
    %1 = vector.load %arg2[%c0_1, %c0_2] : memref<288x128xbf16, #tpu.memory_space<vmem>>, vector<288x128xbf16>
    %cst = arith.constant dense<0.000000e+00> : vector<16x128xf32>
    %2 = tpu.matmul %0, %1, %cst {dimension_numbers = #tpu.dot_dimension_numbers<[1], [0], [0], [1], [0, 0, 1, 1], [], []>} : vector<16x288xbf16>, vector<288x128xbf16>, vector<16x128xf32> -> vector<16x128xf32>
    %c0_3 = arith.constant 0 : index
    %c0_4 = arith.constant 0 : index
    %3 = vector.load %arg3[%c0_3, %c0_4] : memref<1x128xf32, #tpu.memory_space<vmem>>, vector<1x128xf32>
    %4 = vector.broadcast %3 : vector<1x128xf32> to vector<16x128xf32>
    %5 = arith.addf %2, %4 : vector<16x128xf32>
    %cst_5 = arith.constant 0.000000e+00 : f32
    %6 = vector.broadcast %cst_5 : f32 to vector<16x128xf32>
    %7 = arith.maximumf %5, %6 : vector<16x128xf32>
    %c0_6 = arith.constant 0 : index
    %c0_7 = arith.constant 0 : index
    %8 = vector.load %arg4[%c0_6, %c0_7] : memref<16x128xf32, #tpu.memory_space<vmem>>, vector<16x128xf32>
    tpu.vector_store %arg4[%c0_6, %c0_7], %7 {strides = array<i32>} : memref<16x128xf32, #tpu.memory_space<vmem>>, vector<16x128xf32>,
    return
  }
  func.func @transform_0(%arg0: i32) -> (i32, i32) {
    %c0_i32 = arith.constant 0 : i32
    %c0_i32_0 = arith.constant 0 : i32
    return %arg0, %c0_i32 : i32, i32
  }
  func.func @transform_1(%arg0: i32) -> (i32, i32) {
    %c0_i32 = arith.constant 0 : i32
    %c0_i32_0 = arith.constant 0 : i32
    %c0_i32_1 = arith.constant 0 : i32
    return %c0_i32, %c0_i32_0 : i32, i32
  }
  func.func @transform_2(%arg0: i32) -> (i32, i32) {
    %c0_i32 = arith.constant 0 : i32
    %c0_i32_0 = arith.constant 0 : i32
    %c0_i32_1 = arith.constant 0 : i32
    return %c0_i32, %c0_i32_0 : i32, i32
  }
  func.func @transform_3(%arg0: i32) -> (i32, i32) {
    %c0_i32 = arith.constant 0 : i32
    %c0_i32_0 = arith.constant 0 : i32
    return %arg0, %c0_i32 : i32, i32
  }
}

</mosaic_0001>

<bundles_post_ra>
// kernel: _lambda_.15
= control target key start
LH: loop header
LB: loop body
LE: loop exit
PB: predicated region body
PF: predicated region fallthrough
CT: control target
= control target key end

     0   :  { %s1334_s0 = inlined_call_operand.vmem [shape: f32[256,128], index: 0, kind: input, shape index: {}, may-alias: {0,1}]   ;;  %s1335_s1 = inlined_call_operand.vmem [shape: f32[256,128], index: 1, kind: input, shape index: {}, may-alias: {0,1}]   ;;  %s1336_s2 = inlined_call_operand.hbm [shape: f32[1,1], index: 2, kind: output, shape index: {}]  }
   0x1   :  { %v747_v0 = vld [vmem:[%s1335_s1 + $0x80] sm:$0xff]  ;;  %v757_v2 = vld [vmem:[%s1335_s1 + $0x88] sm:$0xff]  ;;  %v775_v8 = vld [vmem:[%s1335_s1 + $0x90] sm:$0xff] }
   0x2   :  { %v752_v1 = vld [vmem:[%s1334_s0] sm:$0xff]  ;;  %v264_v3 = vmul.f32 %v747_v0, %v747_v0  ;;  %v766_v5 = vld [vmem:[%s1334_s0 + $0x8] sm:$0xff]  ;;  %v265_v6 = vmul.f32 %v757_v2, %v757_v2  ;;  %v780_v9 = vld [vmem:[%s1334_s0 + $0x10] sm:$0xff]  ;;  %v266_v10 = vmul.f32 %v775_v8, %v775_v8 }
   0x3   :  { %v72_v4 = vmul.f32 %v752_v1, %v752_v1  ;;  %v73_v7 = vmul.f32 %v766_v5, %v766_v5  ;;  %v74_v11 = vmul.f32 %v780_v9, %v780_v9  ;;  %v789_v12 = vld [vmem:[%s1335_s1 + $0x98] sm:$0xff] }
   0x4   :  { %280 = vadd.xlane.f32.xlu1 %v264_v3  ;;  %v794_v13 = vld [vmem:[%s1334_s0 + $0x18] sm:$0xff] }
   0x5   :  { %88 = vadd.xlane.f32.xlu0 %v72_v4 }
   0x8   :  { %282 = vadd.xlane.f32.xlu1 %v265_v6 }
   0x9   :  { %90 = vadd.xlane.f32.xlu0 %v73_v7 }
   0xa   :  { %7 = vsyncpa [#allocation3], 0  ;;  %v267_v14 = vmul.f32 %v789_v12, %v789_v12  ;;  %v75_v15 = vmul.f32 %v794_v13, %v794_v13  ;;  %v803_v16 = vld [vmem:[%s1335_s1 + $0xa0] sm:$0xff]  ;;  %v817_v20 = vld [vmem:[%s1335_s1 + $0xa8] sm:$0xff]  ;;  %s716_s19 = scalar_lea.hbm %s1336_s2, 16 }
   0xb   :  { %v808_v17 = vld [vmem:[%s1334_s0 + $0x20] sm:$0xff]  ;;  %v268_v18 = vmul.f32 %v803_v16, %v803_v16  ;;  %v822_v21 = vld [vmem:[%s1334_s0 + $0x28] sm:$0xff]  ;;  %v269_v22 = vmul.f32 %v817_v20, %v817_v20  ;;  %v831_v24 = vld [vmem:[%s1335_s1 + $0xb0] sm:$0xff]  ;;  %p717_p0 = scmp.ne.s32.totalorder %s1336_s2, %s716_s19  ;;  %p720_p1 = scmp.lt.u32.totalorder %s716_s19, %s1336_s2 }
   0xc   :  { %284 = vadd.xlane.f32.xlu1 %v266_v10  ;;  %v76_v19 = vmul.f32 %v808_v17, %v808_v17  ;;  %v77_v23 = vmul.f32 %v822_v21, %v822_v21  ;;  %v836_v25 = vld [vmem:[%s1334_s0 + $0x30] sm:$0xff]  ;;  %v270_v26 = vmul.f32 %v831_v24, %v831_v24  ;;  %v845_v28 = vld [vmem:[%s1335_s1 + $0xb8] sm:$0xff]  ;;  %v859_v32 = vld [vmem:[%s1335_s1 + $0xc0] sm:$0xff] }
   0xd   :  { %92 = vadd.xlane.f32.xlu0 %v74_v11  ;;  %v78_v27 = vmul.f32 %v836_v25, %v836_v25  ;;  %v850_v29 = vld [vmem:[%s1334_s0 + $0x38] sm:$0xff]  ;;  %v271_v30 = vmul.f32 %v845_v28, %v845_v28  ;;  %v864_v33 = vld [vmem:[%s1334_s0 + $0x40] sm:$0xff]  ;;  %v272_v34 = vmul.f32 %v859_v32, %v859_v32  ;;  %v873_v36 = vld [vmem:[%s1335_s1 + $0xc8] sm:$0xff]  ;;  %p722_p2 = pnand %p720_p1, %p717_p0 }
   0xe   :  { %v79_v31 = vmul.f32 %v850_v29, %v850_v29  ;;  %v80_v35 = vmul.f32 %v864_v33, %v864_v33  ;;  %v878_v37 = vld [vmem:[%s1334_s0 + $0x48] sm:$0xff]  ;;  %v273_v38 = vmul.f32 %v873_v36, %v873_v36  ;;  %v887_v40 = vld [vmem:[%s1335_s1 + $0xd0] sm:$0xff]  ;;  %v901_v44 = vld [vmem:[%s1335_s1 + $0xd8] sm:$0xff] }
   0xf   :  { %v81_v39 = vmul.f32 %v878_v37, %v878_v37  ;;  %v892_v41 = vld [vmem:[%s1334_s0 + $0x50] sm:$0xff]  ;;  %v274_v42 = vmul.f32 %v887_v40, %v887_v40  ;;  %v906_v45 = vld [vmem:[%s1334_s0 + $0x58] sm:$0xff]  ;;  %v275_v46 = vmul.f32 %v901_v44, %v901_v44  ;;  %v915_v48 = vld [vmem:[%s1335_s1 + $0xe0] sm:$0xff] }
  0x10   :  { %286 = vadd.xlane.f32.xlu1 %v267_v14  ;;  %v82_v43 = vmul.f32 %v892_v41, %v892_v41  ;;  %v83_v47 = vmul.f32 %v906_v45, %v906_v45  ;;  %v920_v49 = vld [vmem:[%s1334_s0 + $0x60] sm:$0xff]  ;;  %v276_v50 = vmul.f32 %v915_v48, %v915_v48  ;;  %v929_v52 = vld [vmem:[%s1335_s1 + $0xe8] sm:$0xff]  ;;  %v943_v56 = vld [vmem:[%s1335_s1 + $0xf0] sm:$0xff] }
  0x11   :  { %94 = vadd.xlane.f32.xlu0 %v75_v15  ;;  %v84_v51 = vmul.f32 %v920_v49, %v920_v49  ;;  %v934_v53 = vld [vmem:[%s1334_s0 + $0x68] sm:$0xff]  ;;  %v277_v54 = vmul.f32 %v929_v52, %v929_v52  ;;  %v948_v57 = vld [vmem:[%s1334_s0 + $0x70] sm:$0xff]  ;;  %v278_v58 = vmul.f32 %v943_v56, %v943_v56  ;;  %v957_v60 = vld [vmem:[%s1335_s1 + $0xf8] sm:$0xff] }
  0x12   :  { %v85_v55 = vmul.f32 %v934_v53, %v934_v53  ;;  %v86_v59 = vmul.f32 %v948_v57, %v948_v57  ;;  %1338 = vst [vmem:[#allocation5_spill] sm:$0xff] %v957_v60  ;;  %v962_v61 = vld [vmem:[%s1334_s0 + $0x78] sm:$0xff]  ;;  %v279_v62 = vmul.f32 %v957_v60, %v957_v60 }
  0x13   :  { %v87_v63 = vmul.f32 %v962_v61, %v962_v61 }
  0x14   :  { %288 = vadd.xlane.f32.xlu1 %v268_v18 }
  0x15   :  { %96 = vadd.xlane.f32.xlu0 %v76_v19 }
  0x18   :  { %290 = vadd.xlane.f32.xlu1 %v269_v22 }
  0x19   :  { %98 = vadd.xlane.f32.xlu0 %v77_v23 }
  0x1c   :  { %292 = vadd.xlane.f32.xlu1 %v270_v26 }
  0x1d   :  { %100 = vadd.xlane.f32.xlu0 %v78_v27 }
  0x20   :  { %294 = vadd.xlane.f32.xlu1 %v271_v30 }
  0x21   :  { %102 = vadd.xlane.f32.xlu0 %v79_v31 }
  0x24   :  { %296 = vadd.xlane.f32.xlu1 %v272_v34 }
  0x25   :  { %104 = vadd.xlane.f32.xlu0 %v80_v35 }
  0x28   :  { %298 = vadd.xlane.f32.xlu1 %v273_v38 }
  0x29   :  { %106 = vadd.xlane.f32.xlu0 %v81_v39 }
  0x2c   :  { %300 = vadd.xlane.f32.xlu1 %v274_v42 }
  0x2d   :  { %108 = vadd.xlane.f32.xlu0 %v82_v43 }
  0x30   :  { %302 = vadd.xlane.f32.xlu1 %v275_v46 }
  0x31   :  { %110 = vadd.xlane.f32.xlu0 %v83_v47 }
  0x34   :  { %304 = vadd.xlane.f32.xlu1 %v276_v50 }
  0x35   :  { %112 = vadd.xlane.f32.xlu0 %v84_v51 }
  0x38   :  { %306 = vadd.xlane.f32.xlu1 %v277_v54 }
  0x39   :  { %114 = vadd.xlane.f32.xlu0 %v85_v55 }
  0x3c   :  { %308 = vadd.xlane.f32.xlu1 %v278_v58 }
  0x3d   :  { %116 = vadd.xlane.f32.xlu0 %v86_v59 }
  0x40   :  { %310 = vadd.xlane.f32.xlu1 %v279_v62 }
  0x41   :  { %118 = vadd.xlane.f32.xlu0 %v87_v63 }
  0x91   :  { %v281_v3 = vpop.xlane.xlu1 %280 }
  0x92   :  { %v89_v4 = vpop.xlane.xlu0 %88  ;;  %588 = vrsqrt.f32 %v281_v3  ;;  %vm314_vm0 = vcmp.eq.f32.partialorder %v281_v3, inf  ;;  %vm316_vm1 = vcmp.eq.f32.partialorder %v281_v3, 0.0  ;;  %v317_v38 = vand.u32 2147483648, %v281_v3 }
  0x93   :  { %590 = vrsqrt.f32 %v89_v4  ;;  %vm122_vm2 = vcmp.eq.f32.partialorder %v89_v4, inf  ;;  %vm124_vm3 = vcmp.eq.f32.partialorder %v89_v4, 0.0  ;;  %v125_v43 = vand.u32 2147483648, %v89_v4 }
  0x95   :  { %v283_v6 = vpop.xlane.xlu1 %282 }
  0x96   :  { %v91_v7 = vpop.xlane.xlu0 %90  ;;  %592 = vrsqrt.f32 %v283_v6  ;;  %vm321_vm4 = vcmp.eq.f32.partialorder %v283_v6, inf  ;;  %vm323_vm5 = vcmp.eq.f32.partialorder %v283_v6, 0.0  ;;  %v324_v51 = vand.u32 2147483648, %v283_v6 }
  0x97   :  { %594 = vrsqrt.f32 %v91_v7  ;;  %vm129_vm6 = vcmp.eq.f32.partialorder %v91_v7, inf  ;;  %vm131_vm7 = vcmp.eq.f32.partialorder %v91_v7, 0.0 }
  0x99   :  { %v285_v10 = vpop.xlane.xlu1 %284 }
  0x9a   :  { %v968_v11 = vpop.xlane.xlu0 %92  ;;  %596 = vrsqrt.f32 %v285_v10  ;;  %vm328_vm8 = vcmp.eq.f32.partialorder %v285_v10, inf  ;;  %vm330_vm9 = vcmp.eq.f32.partialorder %v285_v10, 0.0 }
  0x9b   :  { %598 = vrsqrt.f32 %v968_v11  ;;  %vm136_vm10 = vcmp.eq.f32.partialorder %v968_v11, inf  ;;  %vm138_vm11 = vcmp.eq.f32.partialorder %v968_v11, 0.0 }
  0x9c   :  { %v589_v14 = vpop.eup %588 }
  0x9d   :  { %v591_v15 = vpop.eup %590  ;;  %v313_v18 = vmul.f32 %v589_v14, %v281_v3  ;;  %v971_v19 = vpop.xlane.xlu1 %286 }
  0x9e   :  { %v973_v22 = vpop.xlane.xlu0 %94  ;;  %v121_v23 = vmul.f32 %v591_v15, %v89_v4  ;;  %600 = vrsqrt.f32 %v971_v19  ;;  %vm335_vm12 = vcmp.eq.f32.partialorder %v971_v19, inf  ;;  %vm337_vm14 = vcmp.eq.f32.partialorder %v971_v19, 0.0 }
  0x9f   :  { %602 = vrsqrt.f32 %v973_v22  ;;  %v315_v30 = vsel %vm314_vm0, %v281_v3, %v313_v18  ;;  %v132_v3 = vand.u32 2147483648, %v91_v7  ;;  %vm143_vm13 = vcmp.eq.f32.partialorder %v973_v22, inf }
  0xa0   :  { %v593_v26 = vpop.eup %592  ;;  %v123_v39 = vsel %vm122_vm2, %v89_v4, %v121_v23  ;;  %v318_v47 = vsel %vm316_vm1, %v317_v38, %v315_v30  ;;  %v331_v23 = vand.u32 2147483648, %v285_v10  ;;  %vm145_vm15 = vcmp.eq.f32.partialorder %v973_v22, 0.0 }
  0xa1   :  { %v595_v27 = vpop.eup %594  ;;  %v320_v31 = vmul.f32 %v593_v26, %v283_v6  ;;  %v977_v34 = vpop.xlane.xlu1 %288  ;;  %v126_v55 = vsel %vm124_vm3, %v125_v43, %v123_v39  ;;  %v424_v14 = vadd.f32 1e-10, %v318_v47 }
  0xa2   :  { %v979_v35 = vpop.xlane.xlu0 %96  ;;  %v128_v42 = vmul.f32 %v595_v27, %v91_v7  ;;  %604 = vrsqrt.f32 %v977_v34  ;;  %v232_v27 = vadd.f32 1e-10, %v126_v55  ;;  %vm342_vm0 = vcmp.eq.f32.partialorder %v977_v34, inf }
  0xa3   :  { %v322_v50 = vsel %vm321_vm4, %v283_v6, %v320_v31  ;;  %606 = vrsqrt.f32 %v979_v35  ;;  %vm344_vm1 = vcmp.eq.f32.partialorder %v977_v34, 0.0  ;;  %vm150_vm2 = vcmp.eq.f32.partialorder %v979_v35, inf }
  0xa4   :  { %v597_v46 = vpop.eup %596  ;;  %v130_v58 = vsel %vm129_vm6, %v91_v7, %v128_v42  ;;  %v325_v15 = vsel %vm323_vm5, %v324_v51, %v322_v50  ;;  %vm152_vm3 = vcmp.eq.f32.partialorder %v979_v35, 0.0 }
  0xa5   :  { %v599_v54 = vpop.eup %598  ;;  %v327_v59 = vmul.f32 %v597_v46, %v285_v10  ;;  %v982_v62 = vpop.xlane.xlu1 %290  ;;  %v133_v30 = vsel %vm131_vm7, %v132_v3, %v130_v58  ;;  %v425_v43 = vadd.f32 1e-10, %v325_v15  ;;  %v139_v46 = vand.u32 2147483648, %v968_v11 }
  0xa6   :  { %v984_v63 = vpop.xlane.xlu0 %98  ;;  %v135_v4 = vmul.f32 %v599_v54, %v968_v11  ;;  %608 = vrsqrt.f32 %v982_v62  ;;  %v338_v3 = vand.u32 2147483648, %v971_v19  ;;  %vm349_vm4 = vcmp.eq.f32.partialorder %v982_v62, inf }
  0xa7   :  { %v329_v18 = vsel %vm328_vm8, %v285_v10, %v327_v59  ;;  %610 = vrsqrt.f32 %v984_v63  ;;  %v233_v10 = vadd.f32 1e-10, %v133_v30  ;;  %vm351_vm5 = vcmp.eq.f32.partialorder %v982_v62, 0.0 }
  0xa8   :  { %v601_v26 = vpop.eup %600  ;;  %v332_v38 = vsel %vm330_vm9, %v331_v23, %v329_v18  ;;  %v137_v7 = vsel %vm136_vm10, %v968_v11, %v135_v4  ;;  %612 = vrcp.f32 %v424_v14  ;;  %v146_v14 = vand.u32 2147483648, %v973_v22 }
  0xa9   :  { %v603_v31 = vpop.eup %602  ;;  %v334_v39 = vmul.f32 %v601_v26, %v971_v19  ;;  %v993_v42 = vpop.xlane.xlu1 %292  ;;  %614 = vrcp.f32 %v232_v27  ;;  %v426_v50 = vadd.f32 1e-10, %v332_v38  ;;  %v140_v51 = vsel %vm138_vm11, %v139_v46, %v137_v7 }
  0xaa   :  { %v995_v6 = vpop.xlane.xlu0 %100  ;;  %v142_v47 = vmul.f32 %v603_v31, %v973_v22  ;;  %616 = vrsqrt.f32 %v993_v42  ;;  %v234_v4 = vadd.f32 1e-10, %v140_v51  ;;  %vm157_vm6 = vcmp.eq.f32.partialorder %v984_v63, inf }
  0xab   :  { %v336_v55 = vsel %vm335_vm12, %v971_v19, %v334_v39  ;;  %618 = vrcp.f32 %v425_v43  ;;  %vm159_vm7 = vcmp.eq.f32.partialorder %v984_v63, 0.0  ;;  %vm356_vm8 = vcmp.eq.f32.partialorder %v993_v42, inf }
  0xac   :  { %v605_v54 = vpop.eup %604  ;;  %v144_v11 = vsel %vm143_vm13, %v973_v22, %v142_v47  ;;  %620 = vrcp.f32 %v233_v10  ;;  %v339_v18 = vsel %vm337_vm14, %v338_v3, %v336_v55  ;;  %v345_v47 = vand.u32 2147483648, %v977_v34 }
  0xad   :  { %v1005_v58 = vpop.xlane.xlu1 %294  ;;  %v607_v15 = vpop.eup %606  ;;  %622 = vrcp.f32 %v426_v50  ;;  %v341_v23 = vmul.f32 %v605_v54, %v977_v34  ;;  %v147_v26 = vsel %vm145_vm15, %v146_v14, %v144_v11  ;;  %v427_v19 = vadd.f32 1e-10, %v339_v18 }
  0xae   :  { %v1007_v59 = vpop.xlane.xlu0 %102  ;;  %624 = vrsqrt.f32 %v995_v6  ;;  %v149_v38 = vmul.f32 %v607_v15, %v979_v35  ;;  %v235_v22 = vadd.f32 1e-10, %v147_v26  ;;  %v153_v54 = vand.u32 2147483648, %v979_v35 }
  0xaf   :  { %626 = vrsqrt.f32 %v1005_v58  ;;  %v343_v39 = vsel %vm342_vm0, %v977_v34, %v341_v23  ;;  %v352_v14 = vand.u32 2147483648, %v982_v62  ;;  %vm358_vm9 = vcmp.eq.f32.partialorder %v993_v42, 0.0 }
  0xb0   :  { %v609_v31 = vpop.eup %608  ;;  %628 = vrcp.f32 %v234_v4  ;;  %v346_v11 = vsel %vm344_vm1, %v345_v47, %v343_v39  ;;  %v151_v4 = vsel %vm150_vm2, %v979_v35, %v149_v38  ;;  %vm164_vm10 = vcmp.eq.f32.partialorder %v995_v6, inf }
  0xb1   :  { %v1016_v27 = vpop.xlane.xlu1 %296  ;;  %v611_v7 = vpop.eup %610  ;;  %v348_v43 = vmul.f32 %v609_v31, %v982_v62  ;;  %630 = vrsqrt.f32 %v1007_v59  ;;  %v428_v39 = vadd.f32 1e-10, %v346_v11  ;;  %vm166_vm11 = vcmp.eq.f32.partialorder %v995_v6, 0.0 }
  0xb2   :  { %v1018_v30 = vpop.xlane.xlu0 %104  ;;  %v613_v46 = vpop.eup %612  ;;  %v156_v10 = vmul.f32 %v611_v7, %v984_v63  ;;  %632 = vrcp.f32 %v427_v19  ;;  %vm363_vm12 = vcmp.eq.f32.partialorder %v1005_v58, inf  ;;  %vm365_vm13 = vcmp.eq.f32.partialorder %v1005_v58, 0.0 }
  0xb3   :  { %v615_v51 = vpop.eup %614  ;;  %v472_v18 = vmul.f32 %v613_v46, %v747_v0  ;;  %634 = vrcp.f32 %v235_v22  ;;  %v350_v23 = vsel %vm349_vm4, %v982_v62, %v348_v43  ;;  %v154_v0 = vsel %vm152_vm3, %v153_v54, %v151_v4 }
  0xb4   :  { %v617_v3 = vpop.eup %616  ;;  %v456_v31 = vmul.f32 %v615_v51, %v752_v1  ;;  %v158_v19 = vsel %vm157_vm6, %v984_v63, %v156_v10  ;;  %636 = vrsqrt.f32 %v1016_v27  ;;  %v160_v22 = vand.u32 2147483648, %v984_v63 }
  0xb5   :  { %v1030_v50 = vpop.xlane.xlu1 %298  ;;  %v619_v15 = vpop.eup %618  ;;  %v355_v34 = vmul.f32 %v617_v3, %v993_v42  ;;  %v353_v1 = vsel %vm351_vm5, %v352_v14, %v350_v23  ;;  %v359_v46 = vand.u32 2147483648, %v993_v42  ;;  %638 = vrsqrt.f32 %v1018_v30 }
  0xb6   :  { %v1036_v55 = vpop.xlane.xlu0 %106  ;;  %v621_v26 = vpop.eup %620  ;;  %v161_v10 = vsel %vm159_vm7, %v160_v22, %v158_v19  ;;  %v488_v54 = vsub.f32 %v456_v31, %v472_v18  ;;  %v236_v62 = vadd.f32 1e-10, %v154_v0  ;;  %v473_v11 = vmul.f32 %v619_v15, %v757_v2 }
  0xb7   :  { %v623_v7 = vpop.eup %622  ;;  %v357_v3 = vsel %vm356_vm8, %v993_v42, %v355_v34  ;;  %v457_v4 = vmul.f32 %v621_v26, %v766_v5  ;;  %640 = vrcp.f32 %v428_v39  ;;  %v429_v14 = vadd.f32 1e-10, %v353_v1 }
  0xb8   :  { %v625_v43 = vpop.eup %624  ;;  %v237_v22 = vadd.f32 1e-10, %v161_v10  ;;  %642 = vrsqrt.f32 %v1030_v50  ;;  %v474_v18 = vmul.f32 %v623_v7, %v775_v8  ;;  %v360_v2 = vsel %vm358_vm9, %v359_v46, %v357_v3 }
  0xb9   :  { %v1049_v38 = vpop.xlane.xlu1 %300  ;;  %v627_v47 = vpop.eup %626  ;;  %v163_v51 = vmul.f32 %v625_v43, %v995_v6  ;;  %v167_v5 = vand.u32 2147483648, %v995_v6  ;;  %v1079_v26 = vmul.f32 %v488_v54, %v488_v54  ;;  %644 = vrcp.f32 %v236_v62 }
  0xba   :  { %v1063_v35 = vpop.xlane.xlu0 %108  ;;  %v629_v63 = vpop.eup %628  ;;  %v362_v60 = vmul.f32 %v627_v47, %v1005_v58  ;;  %646 = vrcp.f32 %v429_v14  ;;  %v489_v0 = vsub.f32 %v457_v4, %v473_v11  ;;  %v430_v1 = vadd.f32 1e-10, %v360_v2 }
  0xbb   :  { %v631_v19 = vpop.eup %630  ;;  %v165_v43 = vsel %vm164_vm10, %v995_v6, %v163_v51  ;;  %v458_v31 = vmul.f32 %v629_v63, %v780_v9  ;;  %v366_v9 = vand.u32 2147483648, %v1005_v58  ;;  %648 = vrcp.f32 %v237_v22 }
  0xbc   :  { %v633_v15 = vpop.eup %632  ;;  %v168_v8 = vsel %vm166_vm11, %v167_v5, %v165_v43  ;;  %v170_v42 = vmul.f32 %v631_v19, %v1007_v59  ;;  %v364_v46 = vsel %vm363_vm12, %v1005_v58, %v362_v60  ;;  %vm171_vm14 = vcmp.eq.f32.partialorder %v1007_v59, inf }
  0xbd   :  { %v1069_v23 = vpop.xlane.xlu1 %302  ;;  %v635_v34 = vpop.eup %634  ;;  %v490_v47 = vsub.f32 %v458_v31, %v474_v18  ;;  %vm173_vm15 = vcmp.eq.f32.partialorder %v1007_v59, 0.0  ;;  %650 = vrsqrt.f32 %v1036_v55  ;;  %v475_v10 = vmul.f32 %v633_v15, %v789_v12 }
  0xbe   :  { %v1087_v7 = vpop.xlane.xlu0 %110  ;;  %v637_v39 = vpop.eup %636  ;;  %v459_v51 = vmul.f32 %v635_v34, %v794_v13  ;;  %v238_v63 = vadd.f32 1e-10, %v168_v8  ;;  %652 = vrsqrt.f32 %v1049_v38  ;;  %v367_v60 = vsel %vm365_vm13, %v366_v9, %v364_v46 }
  0xbf   :  { %v639_v54 = vpop.eup %638  ;;  %v172_v62 = vsel %vm171_vm14, %v1007_v59, %v170_v42  ;;  %v369_v3 = vmul.f32 %v637_v39, %v1016_v27  ;;  %654 = vrsqrt.f32 %v1063_v35  ;;  %v1103_v11 = vmul.f32 %v489_v0, %v489_v0 }
  0xc0   :  { %656 = vrcp.f32 %v430_v1  ;;  %v174_v12 = vand.u32 2147483648, %v1007_v59  ;;  %vm370_vm0 = vcmp.eq.f32.partialorder %v1016_v27, inf  ;;  %v1107_v4 = vmul.f32 %v490_v47, %v490_v47 }
  0xc1   :  { %v1093_v6 = vpop.xlane.xlu1 %304  ;;  %v641_v13 = vpop.eup %640  ;;  %vm372_vm1 = vcmp.eq.f32.partialorder %v1016_v27, 0.0  ;;  %v177_v58 = vmul.f32 %v639_v54, %v1018_v30  ;;  %658 = vrsqrt.f32 %v1069_v23  ;;  %v431_v22 = vadd.f32 1e-10, %v367_v60 }
  0xc2   :  { %v1112_v14 = vpop.xlane.xlu0 %112  ;;  %v643_v19 = vpop.eup %642  ;;  %660 = vrcp.f32 %v238_v63  ;;  %v175_v43 = vsel %vm173_vm15, %v174_v12, %v172_v62  ;;  %v373_v18 = vand.u32 2147483648, %v1016_v27  ;;  %v1117_v31 = vsub.f32 %v459_v51, %v475_v10 }
  0xc3   :  { %v371_v2 = vsel %vm370_vm0, %v1016_v27, %v369_v3  ;;  %vm178_vm2 = vcmp.eq.f32.partialorder %v1018_v30, inf  ;;  %662 = vrsqrt.f32 %v1087_v7  ;;  %v645_v15 = vpop.eup %644  ;;  %v1125_v34 = vmul.f32 %v641_v13, %v803_v16 }
  0xc4   :  { %vm180_vm3 = vcmp.eq.f32.partialorder %v1018_v30, 0.0  ;;  %v181_v59 = vand.u32 2147483648, %v1018_v30  ;;  %664 = vrsqrt.f32 %v1093_v6  ;;  %v647_v8 = vpop.eup %646  ;;  %v239_v9 = vadd.f32 1e-10, %v175_v43 }
  0xc5   :  { %v1122_v5 = vpop.xlane.xlu1 %306  ;;  %v179_v42 = vsel %vm178_vm2, %v1018_v30, %v177_v58  ;;  %v376_v39 = vmul.f32 %v643_v19, %v1030_v50  ;;  %666 = vrsqrt.f32 %v1112_v14  ;;  %v649_v0 = vpop.eup %648  ;;  %v374_v16 = vsel %vm372_vm1, %v373_v18, %v371_v2 }
  0xc6   :  { %668 = vrcp.f32 %v431_v22  ;;  %vm377_vm4 = vcmp.eq.f32.partialorder %v1030_v50, inf  ;;  %vm379_vm5 = vcmp.eq.f32.partialorder %v1030_v50, 0.0  ;;  %v1138_v46 = vmul.f32 %v645_v15, %v808_v17  ;;  %v1143_v10 = vpop.xlane.xlu0 %114 }
  0xc7   :  { %v651_v1 = vpop.eup %650  ;;  %v380_v47 = vand.u32 2147483648, %v1030_v50  ;;  %vm185_vm6 = vcmp.eq.f32.partialorder %v1036_v55, inf  ;;  %670 = vrsqrt.f32 %v1122_v5  ;;  %v1146_v27 = vmul.f32 %v647_v8, %v817_v20 }
  0xc8   :  { %v653_v51 = vpop.eup %652  ;;  %v182_v63 = vsel %vm180_vm3, %v181_v59, %v179_v42  ;;  %vm187_vm7 = vcmp.eq.f32.partialorder %v1036_v55, 0.0  ;;  %v188_v17 = vand.u32 2147483648, %v1036_v55  ;;  %vm384_vm8 = vcmp.eq.f32.partialorder %v1049_v38, inf }
  0xc9   :  { %v655_v54 = vpop.eup %654  ;;  %672 = vrcp.f32 %v239_v9  ;;  %v432_v60 = vadd.f32 1e-10, %v374_v16  ;;  %v378_v62 = vsel %vm377_vm4, %v1030_v50, %v376_v39  ;;  %vm386_vm9 = vcmp.eq.f32.partialorder %v1049_v38, 0.0  ;;  %v1158_v3 = vpop.xlane.xlu1 %308 }
  0xca   :  { %v387_v20 = vand.u32 2147483648, %v1049_v38  ;;  %v1160_v30 = vpop.eup %656  ;;  %v1163_v12 = vmul.f32 %v649_v0, %v822_v21  ;;  %v184_v13 = vmul.f32 %v651_v1, %v1036_v55  ;;  %vm192_vm10 = vcmp.eq.f32.partialorder %v1063_v35, inf  ;;  %v1181_v8 = vpop.xlane.xlu0 %116 }
  0xcb   :  { %674 = vrsqrt.f32 %v1143_v10  ;;  %v659_v58 = vpop.eup %658  ;;  %v240_v19 = vadd.f32 1e-10, %v182_v63  ;;  %v383_v22 = vmul.f32 %v653_v51, %v1049_v38  ;;  %vm194_vm11 = vcmp.eq.f32.partialorder %v1063_v35, 0.0 }
  0xcc   :  { %v195_v43 = vand.u32 2147483648, %v1063_v35  ;;  %v1171_v18 = vpop.eup %660  ;;  %v381_v21 = vsel %vm379_vm5, %v380_v47, %v378_v62  ;;  %v191_v2 = vmul.f32 %v655_v54, %v1063_v35  ;;  %vm391_vm12 = vcmp.eq.f32.partialorder %v1069_v23, inf }
  0xcd   :  { %676 = vrsqrt.f32 %v1158_v3  ;;  %v663_v15 = vpop.eup %662  ;;  %vm393_vm13 = vcmp.eq.f32.partialorder %v1069_v23, 0.0  ;;  %v394_v59 = vand.u32 2147483648, %v1069_v23  ;;  %vm199_vm14 = vcmp.eq.f32.partialorder %v1087_v7, inf }
  0xce   :  { %678 = vrcp.f32 %v432_v60  ;;  %v665_v9 = vpop.eup %664  ;;  %v186_v50 = vsel %vm185_vm6, %v1036_v55, %v184_v13  ;;  %v390_v42 = vmul.f32 %v659_v58, %v1069_v23  ;;  %vm201_vm15 = vcmp.eq.f32.partialorder %v1087_v7, 0.0 }
  0xcf   :  { %v202_v39 = vand.u32 2147483648, %v1087_v7  ;;  %vm398_vm0 = vcmp.eq.f32.partialorder %v1093_v6, inf  ;;  %v667_v0 = vpop.eup %666  ;;  %680 = vrcp.f32 %v240_v19  ;;  %v433_v16 = vadd.f32 1e-10, %v381_v21  ;;  %v1208_v19 = vpop.xlane.xlu1 %310 }
  0xd0   :  { %v385_v1 = vsel %vm384_vm8, %v1049_v38, %v383_v22  ;;  %vm400_vm1 = vcmp.eq.f32.partialorder %v1093_v6, 0.0  ;;  %v401_v47 = vand.u32 2147483648, %v1093_v6  ;;  %v1195_v51 = vpop.eup %668  ;;  %v193_v63 = vsel %vm192_vm10, %v1063_v35, %v191_v2 }
  0xd1   :  { %v198_v54 = vmul.f32 %v663_v15, %v1087_v7  ;;  %vm206_vm2 = vcmp.eq.f32.partialorder %v1112_v14, inf  ;;  %682 = vrsqrt.f32 %v1181_v8  ;;  %v671_v60 = vpop.eup %670  ;;  %v189_v62 = vsel %vm187_vm7, %v188_v17, %v186_v50 }
  0xd2   :  { %v397_v13 = vmul.f32 %v665_v9, %v1093_v6  ;;  %vm208_vm3 = vcmp.eq.f32.partialorder %v1112_v14, 0.0  ;;  %v209_v58 = vand.u32 2147483648, %v1112_v14  ;;  %v388_v22 = vsel %vm386_vm9, %v387_v20, %v385_v1 }
  0xd3   :  { %v392_v21 = vsel %vm391_vm12, %v1069_v23, %v390_v42  ;;  %v205_v2 = vmul.f32 %v667_v0, %v1112_v14  ;;  %vm405_vm4 = vcmp.eq.f32.partialorder %v1122_v5, inf  ;;  %v1217_v55 = vpop.eup %672  ;;  %684 = vrcp.f32 %v433_v16  ;;  %v1228_v42 = vpop.xlane.xlu0 %118 }
  0xd4   :  { %v196_v17 = vsel %vm194_vm11, %v195_v43, %v193_v63  ;;  %v404_v15 = vmul.f32 %v671_v60, %v1122_v5  ;;  %vm407_vm5 = vcmp.eq.f32.partialorder %v1122_v5, 0.0  ;;  %v241_v20 = vadd.f32 1e-10, %v189_v62 }
  0xd5   :  { %v675_v38 = vpop.eup %674  ;;  %v200_v9 = vsel %vm199_vm14, %v1087_v7, %v198_v54  ;;  %v408_v50 = vand.u32 2147483648, %v1122_v5  ;;  %686 = vrsqrt.f32 %v1208_v19  ;;  %v434_v0 = vadd.f32 1e-10, %v388_v22 }
  0xd6   :  { %v395_v35 = vsel %vm393_vm13, %v394_v59, %v392_v21  ;;  %v399_v43 = vsel %vm398_vm0, %v1093_v6, %v397_v13  ;;  %v212_v16 = vmul.f32 %v675_v38, %v1143_v10  ;;  %v242_v63 = vadd.f32 1e-10, %v196_v17 }
  0xd7   :  { %v677_v1 = vpop.eup %676  ;;  %v207_v54 = vsel %vm206_vm2, %v1112_v14, %v205_v2  ;;  %vm213_vm6 = vcmp.eq.f32.partialorder %v1143_v10, inf  ;;  %vm215_vm7 = vcmp.eq.f32.partialorder %v1143_v10, 0.0  ;;  %v203_v23 = vsel %vm201_vm15, %v202_v39, %v200_v9 }
  0xd8   :  { %v1241_v60 = vpop.eup %678  ;;  %v406_v59 = vsel %vm405_vm4, %v1122_v5, %v404_v15  ;;  %v411_v62 = vmul.f32 %v677_v1, %v1158_v3  ;;  %688 = vrsqrt.f32 %v1228_v42  ;;  %v435_v13 = vadd.f32 1e-10, %v395_v35 }
  0xd9   :  { %690 = vrcp.f32 %v241_v20  ;;  %v402_v22 = vsel %vm400_vm1, %v401_v47, %v399_v43  ;;  %v216_v21 = vand.u32 2147483648, %v1143_v10  ;;  %v1253_v2 = vpop.eup %680  ;;  %v210_v7 = vsel %vm208_vm3, %v209_v58, %v207_v54 }
  0xda   :  { %692 = vrcp.f32 %v434_v0  ;;  %v214_v39 = vsel %vm213_vm6, %v1143_v10, %v212_v16  ;;  %vm412_vm8 = vcmp.eq.f32.partialorder %v1158_v3, inf  ;;  %v243_v15 = vadd.f32 1e-10, %v203_v23 }
  0xdb   :  { %v683_v17 = vpop.eup %682  ;;  %v409_v38 = vsel %vm407_vm5, %v408_v50, %v406_v59  ;;  %v413_v6 = vsel %vm412_vm8, %v1158_v3, %v411_v62  ;;  %vm414_vm9 = vcmp.eq.f32.partialorder %v1158_v3, 0.0  ;;  %694 = vrcp.f32 %v242_v63 }
  0xdc   :  { %v436_v47 = vadd.f32 1e-10, %v402_v22  ;;  %v415_v20 = vand.u32 2147483648, %v1158_v3  ;;  %v219_v14 = vmul.f32 %v683_v17, %v1181_v8  ;;  %696 = vrcp.f32 %v435_v13 }
  0xdd   :  { %v244_v58 = vadd.f32 1e-10, %v210_v7  ;;  %v217_v9 = vsel %vm215_vm7, %v216_v21, %v214_v39  ;;  %vm220_vm10 = vcmp.eq.f32.partialorder %v1181_v8, inf  ;;  %v685_v0 = vpop.eup %684  ;;  %v437_v5 = vadd.f32 1e-10, %v409_v38 }
  0xde   :  { %v416_v50 = vsel %vm414_vm9, %v415_v20, %v413_v6  ;;  %v221_v35 = vsel %vm220_vm10, %v1181_v8, %v219_v14  ;;  %v223_v43 = vand.u32 2147483648, %v1181_v8  ;;  %698 = vrcp.f32 %v243_v15 }
  0xdf   :  { %v687_v16 = vpop.eup %686  ;;  %vm222_vm11 = vcmp.eq.f32.partialorder %v1181_v8, 0.0  ;;  %vm419_vm12 = vcmp.eq.f32.partialorder %v1208_v19, inf  ;;  %vm421_vm13 = vcmp.eq.f32.partialorder %v1208_v19, 0.0  ;;  %700 = vrcp.f32 %v436_v47 }
  0xe0   :  { %v245_v10 = vadd.f32 1e-10, %v217_v9  ;;  %v224_v3 = vsel %vm222_vm11, %v223_v43, %v221_v35  ;;  %v418_v1 = vmul.f32 %v687_v16, %v1208_v19  ;;  %702 = vrcp.f32 %v244_v58 }
  0xe1   :  { %v438_v63 = vadd.f32 1e-10, %v416_v50  ;;  %v422_v54 = vand.u32 2147483648, %v1208_v19  ;;  %vm227_vm14 = vcmp.eq.f32.partialorder %v1228_v42, inf  ;;  %704 = vrcp.f32 %v437_v5 }
  0xe2   :  { %v689_v23 = vpop.eup %688  ;;  %v420_v59 = vsel %vm419_vm12, %v1208_v19, %v418_v1  ;;  %vm229_vm15 = vcmp.eq.f32.partialorder %v1228_v42, 0.0  ;;  %v230_v8 = vand.u32 2147483648, %v1228_v42  ;;  %v246_v13 = vadd.f32 1e-10, %v224_v3 }
  0xe3   :  { %v691_v62 = vpop.eup %690  ;;  %v423_v22 = vsel %vm421_vm13, %v422_v54, %v420_v59  ;;  %v226_v21 = vmul.f32 %v689_v23, %v1228_v42  ;;  %v462_v7 = vmul.f32 %v1171_v18, %v836_v25  ;;  %706 = vrcp.f32 %v245_v10 }
  0xe4   :  { %v693_v39 = vpop.eup %692  ;;  %v439_v17 = vadd.f32 1e-10, %v423_v22  ;;  %v478_v15 = vmul.f32 %v1160_v30, %v831_v24  ;;  %v492_v38 = vsub.f32 %v1138_v46, %v1125_v34  ;;  %708 = vrcp.f32 %v438_v63 }
  0xe5   :  { %v228_v19 = vsel %vm227_vm14, %v1228_v42, %v226_v21  ;;  %v463_v6 = vmul.f32 %v1217_v55, %v850_v29  ;;  %v479_v25 = vmul.f32 %v1195_v51, %v845_v28  ;;  %v695_v18 = vpop.eup %694  ;;  %v493_v24 = vsub.f32 %v1163_v12, %v1146_v27 }
  0xe6   :  { %v231_v47 = vsel %vm229_vm15, %v230_v8, %v228_v19  ;;  %v507_v34 = vmul.f32 %v1117_v31, %v1117_v31  ;;  %v521_v46 = vadd.f32 %v1103_v11, %v1079_v26  ;;  %v697_v30 = vpop.eup %696  ;;  %710 = vrcp.f32 %v246_v13 }
  0xe7   :  { %v247_v20 = vadd.f32 1e-10, %v231_v47  ;;  %v464_v29 = vmul.f32 %v1253_v2, %v864_v33  ;;  %v480_v28 = vmul.f32 %v1241_v60, %v859_v32  ;;  %712 = vrcp.f32 %v439_v17  ;;  %v1339_v17 = vld [vmem:[#allocation5_spill] sm:$0xff] }
  0xe8   :  { %v494_v51 = vsub.f32 %v462_v7, %v478_v15  ;;  %v508_v55 = vmul.f32 %v492_v38, %v492_v38  ;;  %v522_v27 = vadd.f32 %v521_v46, %v1107_v4  ;;  %v699_v12 = vpop.eup %698  ;;  %v465_v31 = vmul.f32 %v691_v62, %v878_v37 }
  0xe9   :  { %714 = vrcp.f32 %v247_v20  ;;  %v701_v42 = vpop.eup %700  ;;  %v481_v26 = vmul.f32 %v685_v0, %v873_v36  ;;  %v495_v11 = vsub.f32 %v463_v6, %v479_v25  ;;  %v509_v14 = vmul.f32 %v493_v24, %v493_v24 }
  0xea   :  { %v523_v58 = vadd.f32 %v522_v27, %v507_v34  ;;  %v703_v9 = vpop.eup %702  ;;  %v466_v33 = vmul.f32 %v695_v18, %v892_v41  ;;  %v482_v32 = vmul.f32 %v693_v39, %v887_v40  ;;  %v496_v60 = vsub.f32 %v464_v29, %v480_v28 }
  0xeb   :  { %v705_v2 = vpop.eup %704  ;;  %v510_v5 = vmul.f32 %v494_v51, %v494_v51  ;;  %v467_v4 = vmul.f32 %v699_v12, %v906_v45  ;;  %v483_v35 = vmul.f32 %v697_v30, %v901_v44  ;;  %v497_v43 = vsub.f32 %v465_v31, %v481_v26 }
  0xec   :  { %v524_v50 = vadd.f32 %v523_v58, %v508_v55  ;;  %v511_v16 = vmul.f32 %v495_v11, %v495_v11  ;;  %v468_v10 = vmul.f32 %v703_v9, %v920_v49  ;;  %v484_v3 = vmul.f32 %v701_v42, %v915_v48 }
  0xed   :  { %v707_v37 = vpop.eup %706  ;;  %v498_v41 = vsub.f32 %v466_v33, %v482_v32  ;;  %v512_v1 = vmul.f32 %v496_v60, %v496_v60  ;;  %v499_v54 = vsub.f32 %v467_v4, %v483_v35  ;;  %v485_v45 = vmul.f32 %v705_v2, %v929_v52 }
  0xee   :  { %v525_v36 = vadd.f32 %v524_v50, %v509_v14  ;;  %v709_v0 = vpop.eup %708  ;;  %v469_v59 = vmul.f32 %v707_v37, %v934_v53  ;;  %v513_v44 = vmul.f32 %v497_v43, %v497_v43  ;;  %v500_v13 = vsub.f32 %v468_v10, %v484_v3 }
  0xef   :  { %v486_v49 = vmul.f32 %v709_v0, %v943_v56  ;;  %v514_v21 = vmul.f32 %v498_v41, %v498_v41  ;;  %v515_v7 = vmul.f32 %v499_v54, %v499_v54 }
  0xf0   :  { %v526_v63 = vadd.f32 %v525_v36, %v510_v5  ;;  %v711_v40 = vpop.eup %710  ;;  %v501_v38 = vsub.f32 %v469_v59, %v485_v45  ;;  %v516_v6 = vmul.f32 %v500_v13, %v500_v13 }
  0xf1   :  { %v713_v23 = vpop.eup %712  ;;  %v470_v22 = vmul.f32 %v711_v40, %v948_v57 }
  0xf2   :  { %v527_v8 = vadd.f32 %v526_v63, %v511_v16  ;;  %v487_v15 = vmul.f32 %v713_v23, %v1339_v17  ;;  %v517_v18 = vmul.f32 %v501_v38, %v501_v38 }
  0xf3   :  { %v715_v62 = vpop.eup %714  ;;  %v502_v53 = vsub.f32 %v470_v22, %v486_v49 }
  0xf4   :  { %v528_v48 = vadd.f32 %v527_v8, %v512_v1  ;;  %v471_v39 = vmul.f32 %v715_v62, %v962_v61 }
  0xf5   :  { %v518_v24 = vmul.f32 %v502_v53, %v502_v53 }
  0xf6   :  { %v529_v19 = vadd.f32 %v528_v48, %v513_v44  ;;  %v503_v25 = vsub.f32 %v471_v39, %v487_v15 }
  0xf8   :  { %v530_v52 = vadd.f32 %v529_v19, %v514_v21  ;;  %v519_v57 = vmul.f32 %v503_v25, %v503_v25 }
  0xfa   :  { %v531_v47 = vadd.f32 %v530_v52, %v515_v7 }
  0xfc   :  { %v532_v34 = vadd.f32 %v531_v47, %v516_v6 }
  0xfe   :  { %v533_v46 = vadd.f32 %v532_v34, %v517_v18 }
 0x100   :  { %v534_v56 = vadd.f32 %v533_v46, %v518_v24 }
 0x102   :  { %v535_v30 = vadd.f32 %v534_v56, %v519_v57 }
 0x104   :  { %536 = vadd.xlane.f32.xlu0 %v535_v30 }
 0x191   :  { %v537_v20 = vpop.xlane.xlu0 %536 }
 0x192   :  { %v538_v29 = vrot.slane %v537_v20, 4 }
 0x194   :  { %v539_v61 = vadd.f32 %v538_v29, %v537_v20 }
 0x196   :  { %v540_v28 = vrot.slane %v539_v61, 2 }
 0x198   :  { %v541_v51 = vadd.f32 %v540_v28, %v539_v61 }
 0x19a   :  { %v542_v55 = vrot.slane %v541_v51, 1 }
 0x19c   :  { %v543_v27 = vadd.f32 %v542_v55, %v541_v51 }
 0x19e   :  { %584 = vpush %v543_v27 }
 0x1cf   :  { %s585_s0 = spop %584 }
 0x1d0   :  { %s545_s1 = smul.f32 0.015625, %s585_s0 }
 0x1d2   :  { %548 = sst [smem:[#allocation2]] %s545_s1 }
 0x1d3   :  { %725 = shalt.err (!%p722_p2)
}
 0x1d4   :  { %s728_s24 = smov [#allocation2]  }
 0x1d5   :  { %556 = dma.smem_to_hbm %s728_s24, 16, %s1336_s2, [#allocation3]  }
 0x1d6   :  { %726 = dma.done.wait [#allocation3], 16  }
 0x1d7   :  { %727 = vsyncadd [#allocation3], 4294967280 }
 0x1d8   :  { %560 = sfence }
 0x1d9   :  { %561 = vsyncpa [#allocation3], 1 }

// kernel: _lambda_.10
= control target key start
LH: loop header
LB: loop body
LE: loop exit
PB: predicated region body
PF: predicated region fallthrough
CT: control target
= control target key end

     0   :  { %vm198_vm0 = vcmask 1044480   ;;  %vm199_vm1 = vcmask 1045504   ;;  %vm149_vm2 = vcmask 220160   ;;  %v546_v1 = vmov 65535   ;;  %s770_s1 = inlined_call_operand.vmem [shape: bf16[27,128], index: 1, kind: input, shape index: {}]   ;;  %s771_s0 = inlined_call_operand.vmem [shape: bf16[256,27], index: 0, kind: input, shape index: {}]   ;;  %s772_s2 = inlined_call_operand.vmem [shape: f32[1,128], index: 2, kind: input, shape index: {}]   ;;  %s773_s3 = inlined_call_operand.vmem [shape: f32[256,128], index: 3, kind: output, shape index: {}]  }
   0x1   :  { %v528_v0 = vld [vmem:[%s770_s1] sm:$0xff]   ;;  %v200_v2 = vsel %vm198_vm0, 4294967295, %v546_v1  ;;  %v529_v3 = vld [vmem:[%s770_s1 + $0x8] sm:$0x3f]   ;;  %v534_v10 = vld [vmem:[%s771_s0 + $0x10] sm:$0xff]  }
   0x2   :  { %487 = vmatprep.subr.bf16.mxu0 %v528_v0  ;;  %523 = vmatprep.subr.bf16.mxu1 %v528_v0  ;;  %v201_v4 = vsel %vm199_vm1, %v200_v2, 0  ;;  %v530_v5 = vld [vmem:[%s771_s0] sm:$0xff]   ;;  %v532_v8 = vld [vmem:[%s771_s0 + $0x8] sm:$0xff]   ;;  %v535_v11 = vld [vmem:[%s771_s0 + $0x50] sm:$0xff]  }
   0x3   :  { %488 = vmatpush3.bf16.msra.mxu0 %v528_v0  ;;  %525 = vmatpush3.bf16.msra.mxu1 %v528_v0  ;;  %v203_v6 = vand.u32 %v529_v3, %v201_v4  ;;  %v531_v7 = vld [vmem:[%s771_s0 + $0x40] sm:$0xff]   ;;  %v533_v9 = vld [vmem:[%s771_s0 + $0x48] sm:$0xff]   ;;  %v536_v12 = vld [vmem:[%s771_s0 + $0x18] sm:$0xff]  }
   0x4   :  { %491 = vmatprep.mubr.msk.bf16.mxu0 %vm149_vm2, %v530_v5  ;;  %507 = vmatprep.mubr.msk.bf16.mxu1 %vm149_vm2, %v531_v7  ;;  %v537_v13 = vld [vmem:[%s771_s0 + $0x58] sm:$0xff]   ;;  %v538_v14 = vld [vmem:[%s771_s0 + $0x20] sm:$0xff]   ;;  %v540_v16 = vld [vmem:[%s771_s0 + $0x28] sm:$0xff]  }
   0x5   :  { %489 = vmatprep.subr.bf16.mxu0 %v203_v6  ;;  %524 = vmatprep.subr.bf16.mxu1 %v203_v6  ;;  %v539_v15 = vld [vmem:[%s771_s0 + $0x60] sm:$0xff]   ;;  %v541_v17 = vld [vmem:[%s771_s0 + $0x68] sm:$0xff]   ;;  %v542_v18 = vld [vmem:[%s771_s0 + $0x30] sm:$0xff]  }
   0x6   :  { %v543_v19 = vld [vmem:[%s771_s0 + $0x70] sm:$0xff]   ;;  %v544_v20 = vld [vmem:[%s771_s0 + $0x38] sm:$0xff]   ;;  %v640_v22 = vld [vmem:[%s772_s2] ss:$0 sm:$0xff] }
   0x7   :  { %490 = vmatpush3.bf16.msra.mxu0 %v203_v6  ;;  %526 = vmatpush3.bf16.msra.mxu1 %v203_v6  ;;  %v545_v21 = vld [vmem:[%s771_s0 + $0x78] sm:$0xff]  }
   0xa   :  { %492 = vmatmul.mubr.msk.bf16.vlgmr.msra.gmra.mrb[0].mxu0 %vm149_vm2, %v532_v8  ;;  %508 = vmatmul.mubr.msk.bf16.vlgmr.msra.gmra.mrb[0].mxu1 %vm149_vm2, %v533_v9 }
   0xb   :  { %495 = vmatprep.mubr.msk.bf16.mxu0 %vm149_vm2, %v534_v10  ;;  %511 = vmatprep.mubr.msk.bf16.mxu1 %vm149_vm2, %v535_v11 }
  0x12   :  { %496 = vmatmul.mubr.msk.bf16.gmra.mrb[4].mxu0 %vm149_vm2, %v536_v12  ;;  %512 = vmatmul.mubr.msk.bf16.gmra.mrb[4].mxu1 %vm149_vm2, %v537_v13 }
  0x13   :  { %499 = vmatprep.mubr.msk.bf16.mxu0 %vm149_vm2, %v538_v14  ;;  %515 = vmatprep.mubr.msk.bf16.mxu1 %vm149_vm2, %v539_v15 }
  0x1a   :  { %500 = vmatmul.mubr.msk.bf16.gmra.mrb[8].mxu0 %vm149_vm2, %v540_v16  ;;  %516 = vmatmul.mubr.msk.bf16.gmra.mrb[8].mxu1 %vm149_vm2, %v541_v17 }
  0x1b   :  { %503 = vmatprep.mubr.msk.bf16.mxu0 %vm149_vm2, %v542_v18  ;;  %519 = vmatprep.mubr.msk.bf16.mxu1 %vm149_vm2, %v543_v19 }
  0x22   :  { %504 = vmatmul.mubr.msk.bf16.gmra.mrb[12].mxu0 %vm149_vm2, %v544_v20  ;;  %520 = vmatmul.mubr.msk.bf16.gmra.mrb[12].mxu1 %vm149_vm2, %v545_v21 }
  0xdd   :  { %v493_v23 = vpop.f32.mrb[0].mxu0  ;;  %v509_v24 = vpop.f32.mrb[0].mxu1 }
  0xde   :  { %v248_v25 = vadd.f32 %v493_v23, %v640_v22  ;;  %v312_v26 = vadd.f32 %v509_v24, %v640_v22  ;;  %v239_v27 = vpop.f32.mrb[1].mxu0  ;;  %v303_v28 = vpop.f32.mrb[1].mxu1 }
  0xdf   :  { %v240_v29 = vadd.f32 %v640_v22, %v239_v27  ;;  %v304_v30 = vadd.f32 %v640_v22, %v303_v28  ;;  %v494_v31 = vpop.f32.mrb[2].mxu0  ;;  %v510_v32 = vpop.f32.mrb[2].mxu1 }
  0xe0   :  { %v368_v33 = vmax.f32 %v248_v25, 0.0  ;;  %v384_v34 = vmax.f32 %v312_v26, 0.0  ;;  %v251_v35 = vadd.f32 %v494_v31, %v640_v22  ;;  %v315_v36 = vadd.f32 %v510_v32, %v640_v22  ;;  %v242_v37 = vpop.f32.mrb[3].mxu0  ;;  %v306_v38 = vpop.f32.mrb[3].mxu1 }
  0xe1   :  { %v366_v39 = vmax.f32 %v240_v29, 0.0  ;;  %v382_v40 = vmax.f32 %v304_v30, 0.0  ;;  %v243_v41 = vadd.f32 %v640_v22, %v242_v37  ;;  %v307_v42 = vadd.f32 %v640_v22, %v306_v38 }
  0xe2   :  { %400 = vst [vmem:[%s773_s3 + $0x10] sm:$0xff] %v368_v33  ;;  %416 = vst [vmem:[%s773_s3 + $0x90] sm:$0xff] %v384_v34  ;;  %v369_v43 = vmax.f32 %v251_v35, 0.0  ;;  %v385_v44 = vmax.f32 %v315_v36, 0.0 }
  0xe3   :  { %398 = vst [vmem:[%s773_s3] sm:$0xff] %v366_v39  ;;  %414 = vst [vmem:[%s773_s3 + $0x80] sm:$0xff] %v382_v40  ;;  %v367_v45 = vmax.f32 %v243_v41, 0.0  ;;  %v383_v46 = vmax.f32 %v307_v42, 0.0 }
  0xe4   :  { %401 = vst [vmem:[%s773_s3 + $0x18] sm:$0xff] %v369_v43  ;;  %417 = vst [vmem:[%s773_s3 + $0x98] sm:$0xff] %v385_v44 }
  0xe5   :  { %399 = vst [vmem:[%s773_s3 + $0x8] sm:$0xff] %v367_v45  ;;  %415 = vst [vmem:[%s773_s3 + $0x88] sm:$0xff] %v383_v46  ;;  %v497_v47 = vpop.f32.mrb[4].mxu0  ;;  %v513_v48 = vpop.f32.mrb[4].mxu1 }
  0xe6   :  { %v264_v49 = vadd.f32 %v497_v47, %v640_v22  ;;  %v328_v50 = vadd.f32 %v513_v48, %v640_v22  ;;  %v255_v51 = vpop.f32.mrb[5].mxu0  ;;  %v319_v52 = vpop.f32.mrb[5].mxu1 }
  0xe7   :  { %v256_v53 = vadd.f32 %v640_v22, %v255_v51  ;;  %v320_v54 = vadd.f32 %v640_v22, %v319_v52  ;;  %v498_v55 = vpop.f32.mrb[6].mxu0  ;;  %v514_v56 = vpop.f32.mrb[6].mxu1 }
  0xe8   :  { %v372_v57 = vmax.f32 %v264_v49, 0.0  ;;  %v388_v58 = vmax.f32 %v328_v50, 0.0  ;;  %v267_v59 = vadd.f32 %v498_v55, %v640_v22  ;;  %v331_v60 = vadd.f32 %v514_v56, %v640_v22  ;;  %v258_v61 = vpop.f32.mrb[7].mxu0  ;;  %v322_v62 = vpop.f32.mrb[7].mxu1 }
  0xe9   :  { %v370_v63 = vmax.f32 %v256_v53, 0.0  ;;  %v386_v0 = vmax.f32 %v320_v54, 0.0  ;;  %v259_v1 = vadd.f32 %v640_v22, %v258_v61  ;;  %v323_v2 = vadd.f32 %v640_v22, %v322_v62 }
  0xea   :  { %404 = vst [vmem:[%s773_s3 + $0x30] sm:$0xff] %v372_v57  ;;  %420 = vst [vmem:[%s773_s3 + $0xb0] sm:$0xff] %v388_v58  ;;  %v373_v3 = vmax.f32 %v267_v59, 0.0  ;;  %v389_v4 = vmax.f32 %v331_v60, 0.0 }
  0xeb   :  { %402 = vst [vmem:[%s773_s3 + $0x20] sm:$0xff] %v370_v63  ;;  %418 = vst [vmem:[%s773_s3 + $0xa0] sm:$0xff] %v386_v0  ;;  %v371_v5 = vmax.f32 %v259_v1, 0.0  ;;  %v387_v6 = vmax.f32 %v323_v2, 0.0 }
  0xec   :  { %405 = vst [vmem:[%s773_s3 + $0x38] sm:$0xff] %v373_v3  ;;  %421 = vst [vmem:[%s773_s3 + $0xb8] sm:$0xff] %v389_v4 }
  0xed   :  { %403 = vst [vmem:[%s773_s3 + $0x28] sm:$0xff] %v371_v5  ;;  %419 = vst [vmem:[%s773_s3 + $0xa8] sm:$0xff] %v387_v6  ;;  %v501_v7 = vpop.f32.mrb[8].mxu0  ;;  %v517_v8 = vpop.f32.mrb[8].mxu1 }
  0xee   :  { %v280_v9 = vadd.f32 %v501_v7, %v640_v22  ;;  %v344_v10 = vadd.f32 %v517_v8, %v640_v22  ;;  %v271_v11 = vpop.f32.mrb[9].mxu0  ;;  %v335_v12 = vpop.f32.mrb[9].mxu1 }
  0xef   :  { %v272_v13 = vadd.f32 %v640_v22, %v271_v11  ;;  %v336_v14 = vadd.f32 %v640_v22, %v335_v12  ;;  %v502_v15 = vpop.f32.mrb[10].mxu0  ;;  %v518_v16 = vpop.f32.mrb[10].mxu1 }
  0xf0   :  { %v376_v17 = vmax.f32 %v280_v9, 0.0  ;;  %v392_v18 = vmax.f32 %v344_v10, 0.0  ;;  %v283_v19 = vadd.f32 %v502_v15, %v640_v22  ;;  %v347_v20 = vadd.f32 %v518_v16, %v640_v22  ;;  %v274_v21 = vpop.f32.mrb[11].mxu0  ;;  %v338_v23 = vpop.f32.mrb[11].mxu1 }
  0xf1   :  { %v374_v24 = vmax.f32 %v272_v13, 0.0  ;;  %v390_v25 = vmax.f32 %v336_v14, 0.0  ;;  %v275_v26 = vadd.f32 %v640_v22, %v274_v21  ;;  %v339_v27 = vadd.f32 %v640_v22, %v338_v23 }
  0xf2   :  { %408 = vst [vmem:[%s773_s3 + $0x50] sm:$0xff] %v376_v17  ;;  %424 = vst [vmem:[%s773_s3 + $0xd0] sm:$0xff] %v392_v18  ;;  %v377_v28 = vmax.f32 %v283_v19, 0.0  ;;  %v393_v29 = vmax.f32 %v347_v20, 0.0 }
  0xf3   :  { %406 = vst [vmem:[%s773_s3 + $0x40] sm:$0xff] %v374_v24  ;;  %422 = vst [vmem:[%s773_s3 + $0xc0] sm:$0xff] %v390_v25  ;;  %v375_v30 = vmax.f32 %v275_v26, 0.0  ;;  %v391_v31 = vmax.f32 %v339_v27, 0.0 }
  0xf4   :  { %409 = vst [vmem:[%s773_s3 + $0x58] sm:$0xff] %v377_v28  ;;  %425 = vst [vmem:[%s773_s3 + $0xd8] sm:$0xff] %v393_v29 }
  0xf5   :  { %407 = vst [vmem:[%s773_s3 + $0x48] sm:$0xff] %v375_v30  ;;  %423 = vst [vmem:[%s773_s3 + $0xc8] sm:$0xff] %v391_v31  ;;  %v505_v32 = vpop.f32.mrb[12].mxu0  ;;  %v521_v33 = vpop.f32.mrb[12].mxu1 }
  0xf6   :  { %v296_v34 = vadd.f32 %v505_v32, %v640_v22  ;;  %v360_v35 = vadd.f32 %v521_v33, %v640_v22  ;;  %v287_v36 = vpop.f32.mrb[13].mxu0  ;;  %v351_v37 = vpop.f32.mrb[13].mxu1 }
  0xf7   :  { %v288_v38 = vadd.f32 %v640_v22, %v287_v36  ;;  %v352_v39 = vadd.f32 %v640_v22, %v351_v37  ;;  %v506_v40 = vpop.f32.mrb[14].mxu0  ;;  %v522_v41 = vpop.f32.mrb[14].mxu1 }
  0xf8   :  { %v380_v42 = vmax.f32 %v296_v34, 0.0  ;;  %v396_v43 = vmax.f32 %v360_v35, 0.0  ;;  %v299_v44 = vadd.f32 %v506_v40, %v640_v22  ;;  %v363_v45 = vadd.f32 %v522_v41, %v640_v22  ;;  %v290_v46 = vpop.f32.mrb[15].mxu0  ;;  %v354_v47 = vpop.f32.mrb[15].mxu1 }
  0xf9   :  { %v378_v48 = vmax.f32 %v288_v38, 0.0  ;;  %v394_v49 = vmax.f32 %v352_v39, 0.0  ;;  %v291_v50 = vadd.f32 %v640_v22, %v290_v46  ;;  %v355_v51 = vadd.f32 %v640_v22, %v354_v47 }
  0xfa   :  { %412 = vst [vmem:[%s773_s3 + $0x70] sm:$0xff] %v380_v42  ;;  %428 = vst [vmem:[%s773_s3 + $0xf0] sm:$0xff] %v396_v43  ;;  %v381_v52 = vmax.f32 %v299_v44, 0.0  ;;  %v397_v53 = vmax.f32 %v363_v45, 0.0 }
  0xfb   :  { %410 = vst [vmem:[%s773_s3 + $0x60] sm:$0xff] %v378_v48  ;;  %426 = vst [vmem:[%s773_s3 + $0xe0] sm:$0xff] %v394_v49  ;;  %v379_v54 = vmax.f32 %v291_v50, 0.0  ;;  %v395_v22 = vmax.f32 %v355_v51, 0.0 }
  0xfc   :  { %413 = vst [vmem:[%s773_s3 + $0x78] sm:$0xff] %v381_v52  ;;  %429 = vst [vmem:[%s773_s3 + $0xf8] sm:$0xff] %v397_v53 }
  0xfd   :  { %411 = vst [vmem:[%s773_s3 + $0x68] sm:$0xff] %v379_v54  ;;  %427 = vst [vmem:[%s773_s3 + $0xe8] sm:$0xff] %v395_v22 }

// kernel: _lambda_.11
= control target key start
LH: loop header
LB: loop body
LE: loop exit
PB: predicated region body
PF: predicated region fallthrough
CT: control target
= control target key end

     0   :  { %vm86_vm0 = vcmask 588800   ;;  %vm99_vm1 = vcmask 1043456   ;;  %s328_s1 = inlined_call_operand.vmem [shape: bf16[72,128], index: 1, kind: input, shape index: {}]   ;;  %s329_s0 = inlined_call_operand.vmem [shape: bf16[64,72], index: 0, kind: input, shape index: {}]   ;;  %s330_s2 = inlined_call_operand.vmem [shape: f32[1,128], index: 2, kind: input, shape index: {}]   ;;  %s331_s3 = inlined_call_operand.vmem [shape: f32[64,128], index: 3, kind: output, shape index: {}]  }
   0x1   :  { %v241_v0 = vld [vmem:[%s328_s1] sm:$0xff]   ;;  %v242_v1 = vld [vmem:[%s328_s1 + $0x8] sm:$0xff]   ;;  %v243_v2 = vld [vmem:[%s328_s1 + $0x10] sm:$0xff]  }
   0x2   :  { %211 = vmatprep.subr.bf16.mxu0 %v241_v0  ;;  %229 = vmatprep.subr.bf16.mxu1 %v241_v0  ;;  %v246_v3 = vld [vmem:[%s329_s0] sm:$0xff]   ;;  %v247_v4 = vld [vmem:[%s329_s0 + $0x10] sm:$0xff]   ;;  %v244_v5 = vld [vmem:[%s328_s1 + $0x18] sm:$0xff]  }
   0x3   :  { %212 = vmatpush3.bf16.msra.mxu0 %v241_v0  ;;  %234 = vmatpush3.bf16.msra.mxu1 %v241_v0  ;;  %v245_v6 = vld [vmem:[%s328_s1 + $0x20] ss:$0 sps:$4 sm:$0xff]   ;;  %v248_v8 = vld [vmem:[%s329_s0 + $0x8] sm:$0xff]   ;;  %v249_v9 = vld [vmem:[%s329_s0 + $0x18] sm:$0xff]  }
   0x4   :  { %213 = vmatprep.subr.bf16.mxu0 %v242_v1  ;;  %230 = vmatprep.subr.bf16.mxu1 %v242_v1  ;;  %v101_v7 = vsel %vm99_vm1, %v245_v6, 0  ;;  %v188_v10 = vld [vmem:[%s330_s2] ss:$0 sm:$0xff] }
   0x5   :  { %221 = vmatprep.mubr.msk.bf16.mxu0 %vm86_vm0, %v246_v3  ;;  %225 = vmatprep.mubr.msk.bf16.mxu1 %vm86_vm0, %v247_v4 }
   0x7   :  { %214 = vmatpush3.bf16.msra.mxu0 %v242_v1  ;;  %235 = vmatpush3.bf16.msra.mxu1 %v242_v1 }
   0x8   :  { %215 = vmatprep.subr.bf16.mxu0 %v243_v2  ;;  %231 = vmatprep.subr.bf16.mxu1 %v243_v2 }
   0xb   :  { %216 = vmatpush3.bf16.msra.mxu0 %v243_v2  ;;  %236 = vmatpush3.bf16.msra.mxu1 %v243_v2 }
   0xc   :  { %217 = vmatprep.subr.bf16.mxu0 %v244_v5  ;;  %232 = vmatprep.subr.bf16.mxu1 %v244_v5 }
   0xf   :  { %218 = vmatpush3.bf16.msra.mxu0 %v244_v5  ;;  %237 = vmatpush3.bf16.msra.mxu1 %v244_v5 }
  0x10   :  { %239 = vmatprep.subr.msk.bf16.mxu0 %vm99_vm1, %v245_v6  ;;  %240 = vmatprep.subr.msk.bf16.mxu1 %vm99_vm1, %v245_v6 }
  0x13   :  { %220 = vmatpush3.bf16.msra.mxu0 %v101_v7  ;;  %238 = vmatpush3.bf16.msra.mxu1 %v101_v7 }
  0x16   :  { %222 = vmatmul.mubr.msk.bf16.vlgmr.msra.gmra.mrb[0].mxu0 %vm86_vm0, %v248_v8  ;;  %226 = vmatmul.mubr.msk.bf16.vlgmr.msra.gmra.mrb[0].mxu1 %vm86_vm0, %v249_v9 }
  0xe9   :  { %v223_v11 = vpop.f32.mrb[0].mxu0  ;;  %v227_v12 = vpop.f32.mrb[0].mxu1 }
  0xea   :  { %v146_v13 = vadd.f32 %v223_v11, %v188_v10  ;;  %v162_v14 = vadd.f32 %v227_v12, %v188_v10  ;;  %v137_v15 = vpop.f32.mrb[1].mxu0  ;;  %v153_v16 = vpop.f32.mrb[1].mxu1 }
  0xeb   :  { %v138_v17 = vadd.f32 %v188_v10, %v137_v15  ;;  %v154_v18 = vadd.f32 %v188_v10, %v153_v16  ;;  %v224_v19 = vpop.f32.mrb[2].mxu0  ;;  %v228_v20 = vpop.f32.mrb[2].mxu1 }
  0xec   :  { %v170_v21 = vmax.f32 %v146_v13, 0.0  ;;  %v174_v22 = vmax.f32 %v162_v14, 0.0  ;;  %v149_v23 = vadd.f32 %v224_v19, %v188_v10  ;;  %v165_v24 = vadd.f32 %v228_v20, %v188_v10  ;;  %v140_v25 = vpop.f32.mrb[3].mxu0  ;;  %v156_v26 = vpop.f32.mrb[3].mxu1 }
  0xed   :  { %v168_v27 = vmax.f32 %v138_v17, 0.0  ;;  %v172_v28 = vmax.f32 %v154_v18, 0.0  ;;  %v141_v29 = vadd.f32 %v188_v10, %v140_v25  ;;  %v157_v30 = vadd.f32 %v188_v10, %v156_v26 }
  0xee   :  { %178 = vst [vmem:[%s331_s3 + $0x10] sm:$0xff] %v170_v21  ;;  %182 = vst [vmem:[%s331_s3 + $0x30] sm:$0xff] %v174_v22  ;;  %v171_v31 = vmax.f32 %v149_v23, 0.0  ;;  %v175_v32 = vmax.f32 %v165_v24, 0.0 }
  0xef   :  { %176 = vst [vmem:[%s331_s3] sm:$0xff] %v168_v27  ;;  %180 = vst [vmem:[%s331_s3 + $0x20] sm:$0xff] %v172_v28  ;;  %v169_v33 = vmax.f32 %v141_v29, 0.0  ;;  %v173_v34 = vmax.f32 %v157_v30, 0.0 }
  0xf0   :  { %179 = vst [vmem:[%s331_s3 + $0x18] sm:$0xff] %v171_v31  ;;  %183 = vst [vmem:[%s331_s3 + $0x38] sm:$0xff] %v175_v32 }
  0xf1   :  { %177 = vst [vmem:[%s331_s3 + $0x8] sm:$0xff] %v169_v33  ;;  %181 = vst [vmem:[%s331_s3 + $0x28] sm:$0xff] %v173_v34 }

// kernel: _lambda_.16
= control target key start
LH: loop header
LB: loop body
LE: loop exit
PB: predicated region body
PF: predicated region fallthrough
CT: control target
= control target key end

     0   :  { %s357_s0 = inlined_call_operand.vmem [shape: f32[64,128], index: 0, kind: input, shape index: {}, may-alias: {0,1}]   ;;  %s358_s1 = inlined_call_operand.vmem [shape: f32[64,128], index: 1, kind: input, shape index: {}, may-alias: {0,1}]   ;;  %s359_s2 = inlined_call_operand.hbm [shape: f32[1,1], index: 2, kind: output, shape index: {}]  }
   0x1   :  { %v267_v0 = vld [vmem:[%s358_s1 + $0x20] sm:$0xff]  ;;  %v277_v2 = vld [vmem:[%s358_s1 + $0x28] sm:$0xff] }
   0x2   :  { %v272_v1 = vld [vmem:[%s357_s0] sm:$0xff]  ;;  %v96_v3 = vmul.f32 %v267_v0, %v267_v0  ;;  %v286_v5 = vld [vmem:[%s357_s0 + $0x8] sm:$0xff] }
   0x3   :  { %v48_v4 = vmul.f32 %v272_v1, %v272_v1 }
   0x4   :  { %7 = vsyncpa [#allocation3], 0  ;;  %100 = vadd.xlane.f32.xlu1 %v96_v3  ;;  %v97_v6 = vmul.f32 %v277_v2, %v277_v2  ;;  %v49_v7 = vmul.f32 %v286_v5, %v286_v5  ;;  %v295_v8 = vld [vmem:[%s358_s1 + $0x30] sm:$0xff]  ;;  %v309_v12 = vld [vmem:[%s358_s1 + $0x38] sm:$0xff]  ;;  %s236_s27 = scalar_lea.hbm %s359_s2, 16 }
   0x5   :  { %52 = vadd.xlane.f32.xlu0 %v48_v4  ;;  %v300_v9 = vld [vmem:[%s357_s0 + $0x10] sm:$0xff]  ;;  %v98_v10 = vmul.f32 %v295_v8, %v295_v8  ;;  %v314_v13 = vld [vmem:[%s357_s0 + $0x18] sm:$0xff]  ;;  %v99_v14 = vmul.f32 %v309_v12, %v309_v12  ;;  %p237_p0 = scmp.ne.s32.totalorder %s359_s2, %s236_s27  ;;  %p240_p1 = scmp.lt.u32.totalorder %s236_s27, %s359_s2 }
   0x6   :  { %v50_v11 = vmul.f32 %v300_v9, %v300_v9  ;;  %v51_v15 = vmul.f32 %v314_v13, %v314_v13 }
   0x7   :  { %p242_p2 = pnand %p240_p1, %p237_p0 }
   0x8   :  { %102 = vadd.xlane.f32.xlu1 %v97_v6 }
   0x9   :  { %54 = vadd.xlane.f32.xlu0 %v49_v7 }
   0xc   :  { %104 = vadd.xlane.f32.xlu1 %v98_v10 }
   0xd   :  { %56 = vadd.xlane.f32.xlu0 %v50_v11 }
  0x10   :  { %106 = vadd.xlane.f32.xlu1 %v99_v14 }
  0x11   :  { %58 = vadd.xlane.f32.xlu0 %v51_v15 }
  0x91   :  { %v101_v16 = vpop.xlane.xlu1 %100 }
  0x92   :  { %v53_v17 = vpop.xlane.xlu0 %52  ;;  %204 = vrsqrt.f32 %v101_v16  ;;  %vm110_vm0 = vcmp.eq.f32.partialorder %v101_v16, inf  ;;  %vm112_vm1 = vcmp.eq.f32.partialorder %v101_v16, 0.0  ;;  %v113_v27 = vand.u32 2147483648, %v101_v16 }
  0x93   :  { %206 = vrsqrt.f32 %v53_v17  ;;  %vm62_vm2 = vcmp.eq.f32.partialorder %v53_v17, inf  ;;  %v65_v30 = vand.u32 2147483648, %v53_v17  ;;  %vm64_vm3 = vcmp.eq.f32.partialorder %v53_v17, 0.0 }
  0x95   :  { %v103_v18 = vpop.xlane.xlu1 %102 }
  0x96   :  { %v55_v19 = vpop.xlane.xlu0 %54  ;;  %208 = vrsqrt.f32 %v103_v18  ;;  %vm117_vm4 = vcmp.eq.f32.partialorder %v103_v18, inf  ;;  %vm119_vm5 = vcmp.eq.f32.partialorder %v103_v18, 0.0  ;;  %v120_v39 = vand.u32 2147483648, %v103_v18 }
  0x97   :  { %210 = vrsqrt.f32 %v55_v19  ;;  %vm69_vm6 = vcmp.eq.f32.partialorder %v55_v19, inf  ;;  %vm71_vm7 = vcmp.eq.f32.partialorder %v55_v19, 0.0  ;;  %v72_v42 = vand.u32 2147483648, %v55_v19 }
  0x99   :  { %v105_v20 = vpop.xlane.xlu1 %104 }
  0x9a   :  { %v57_v21 = vpop.xlane.xlu0 %56  ;;  %212 = vrsqrt.f32 %v105_v20  ;;  %vm124_vm8 = vcmp.eq.f32.partialorder %v105_v20, inf  ;;  %vm126_vm9 = vcmp.eq.f32.partialorder %v105_v20, 0.0  ;;  %v127_v51 = vand.u32 2147483648, %v105_v20 }
  0x9b   :  { %214 = vrsqrt.f32 %v57_v21  ;;  %vm76_vm10 = vcmp.eq.f32.partialorder %v57_v21, inf  ;;  %v79_v54 = vand.u32 2147483648, %v57_v21  ;;  %vm78_vm11 = vcmp.eq.f32.partialorder %v57_v21, 0.0 }
  0x9c   :  { %v205_v22 = vpop.eup %204 }
  0x9d   :  { %v207_v23 = vpop.eup %206  ;;  %v109_v24 = vmul.f32 %v205_v22, %v101_v16  ;;  %v320_v25 = vpop.xlane.xlu1 %106 }
  0x9e   :  { %v322_v26 = vpop.xlane.xlu0 %58  ;;  %v61_v28 = vmul.f32 %v207_v23, %v53_v17  ;;  %216 = vrsqrt.f32 %v320_v25  ;;  %vm131_vm12 = vcmp.eq.f32.partialorder %v320_v25, inf  ;;  %vm133_vm13 = vcmp.eq.f32.partialorder %v320_v25, 0.0 }
  0x9f   :  { %v111_v29 = vsel %vm110_vm0, %v101_v16, %v109_v24  ;;  %218 = vrsqrt.f32 %v322_v26  ;;  %v134_v63 = vand.u32 2147483648, %v320_v25  ;;  %vm83_vm14 = vcmp.eq.f32.partialorder %v322_v26, inf }
  0xa0   :  { %v209_v31 = vpop.eup %208  ;;  %v114_v32 = vsel %vm112_vm1, %v113_v27, %v111_v29  ;;  %v63_v33 = vsel %vm62_vm2, %v53_v17, %v61_v28  ;;  %v86_v6 = vand.u32 2147483648, %v322_v26  ;;  %vm85_vm15 = vcmp.eq.f32.partialorder %v322_v26, 0.0 }
  0xa1   :  { %v211_v34 = vpop.eup %210  ;;  %v136_v35 = vadd.f32 1e-10, %v114_v32  ;;  %v66_v36 = vsel %vm64_vm3, %v65_v30, %v63_v33  ;;  %v116_v37 = vmul.f32 %v209_v31, %v103_v18 }
  0xa2   :  { %v88_v38 = vadd.f32 1e-10, %v66_v36  ;;  %v68_v40 = vmul.f32 %v211_v34, %v55_v19 }
  0xa3   :  { %v118_v41 = vsel %vm117_vm4, %v103_v18, %v116_v37  ;;  %220 = vrcp.f32 %v136_v35 }
  0xa4   :  { %v213_v43 = vpop.eup %212  ;;  %v121_v44 = vsel %vm119_vm5, %v120_v39, %v118_v41  ;;  %v70_v45 = vsel %vm69_vm6, %v55_v19, %v68_v40  ;;  %222 = vrcp.f32 %v88_v38 }
  0xa5   :  { %v215_v46 = vpop.eup %214  ;;  %v137_v47 = vadd.f32 1e-10, %v121_v44  ;;  %v73_v48 = vsel %vm71_vm7, %v72_v42, %v70_v45  ;;  %v123_v49 = vmul.f32 %v213_v43, %v105_v20 }
  0xa6   :  { %v89_v50 = vadd.f32 1e-10, %v73_v48  ;;  %v75_v52 = vmul.f32 %v215_v46, %v57_v21 }
  0xa7   :  { %224 = vrcp.f32 %v137_v47  ;;  %v125_v53 = vsel %vm124_vm8, %v105_v20, %v123_v49 }
  0xa8   :  { %v217_v55 = vpop.eup %216  ;;  %226 = vrcp.f32 %v89_v50  ;;  %v128_v56 = vsel %vm126_vm9, %v127_v51, %v125_v53  ;;  %v77_v57 = vsel %vm76_vm10, %v57_v21, %v75_v52 }
  0xa9   :  { %v219_v58 = vpop.eup %218  ;;  %v138_v59 = vadd.f32 1e-10, %v128_v56  ;;  %v80_v60 = vsel %vm78_vm11, %v79_v54, %v77_v57  ;;  %v130_v61 = vmul.f32 %v217_v55, %v320_v25 }
  0xaa   :  { %v90_v62 = vadd.f32 1e-10, %v80_v60  ;;  %v82_v3 = vmul.f32 %v219_v58, %v322_v26 }
  0xab   :  { %228 = vrcp.f32 %v138_v59  ;;  %v132_v4 = vsel %vm131_vm12, %v320_v25, %v130_v61 }
  0xac   :  { %230 = vrcp.f32 %v90_v62  ;;  %v135_v7 = vsel %vm133_vm13, %v134_v63, %v132_v4  ;;  %v84_v10 = vsel %vm83_vm14, %v322_v26, %v82_v3 }
  0xad   :  { %v139_v11 = vadd.f32 1e-10, %v135_v7  ;;  %v87_v14 = vsel %vm85_vm15, %v86_v6, %v84_v10  ;;  %v221_v16 = vpop.eup %220 }
  0xae   :  { %v91_v15 = vadd.f32 1e-10, %v87_v14  ;;  %v223_v17 = vpop.eup %222  ;;  %v148_v23 = vmul.f32 %v221_v16, %v267_v0 }
  0xaf   :  { %232 = vrcp.f32 %v139_v11  ;;  %v144_v21 = vmul.f32 %v223_v17, %v272_v1 }
  0xb0   :  { %234 = vrcp.f32 %v91_v15 }
  0xb1   :  { %v225_v18 = vpop.eup %224  ;;  %v152_v29 = vsub.f32 %v144_v21, %v148_v23 }
  0xb2   :  { %v227_v19 = vpop.eup %226  ;;  %v149_v20 = vmul.f32 %v225_v18, %v277_v2 }
  0xb3   :  { %v145_v22 = vmul.f32 %v227_v19, %v286_v5  ;;  %v156_v34 = vmul.f32 %v152_v29, %v152_v29 }
  0xb5   :  { %v229_v24 = vpop.eup %228  ;;  %v153_v25 = vsub.f32 %v145_v22, %v149_v20 }
  0xb6   :  { %v231_v26 = vpop.eup %230  ;;  %v150_v27 = vmul.f32 %v229_v24, %v295_v8 }
  0xb7   :  { %v146_v28 = vmul.f32 %v231_v26, %v300_v9  ;;  %v157_v32 = vmul.f32 %v153_v25, %v153_v25 }
  0xb9   :  { %v233_v30 = vpop.eup %232  ;;  %v154_v31 = vsub.f32 %v146_v28, %v150_v27  ;;  %v161_v0 = vadd.f32 %v157_v32, %v156_v34 }
  0xba   :  { %v235_v33 = vpop.eup %234  ;;  %v151_v2 = vmul.f32 %v233_v30, %v309_v12 }
  0xbb   :  { %v147_v1 = vmul.f32 %v235_v33, %v314_v13  ;;  %v158_v5 = vmul.f32 %v154_v31, %v154_v31 }
  0xbd   :  { %v155_v35 = vsub.f32 %v147_v1, %v151_v2  ;;  %v162_v37 = vadd.f32 %v161_v0, %v158_v5 }
  0xbf   :  { %v159_v36 = vmul.f32 %v155_v35, %v155_v35 }
  0xc1   :  { %v163_v38 = vadd.f32 %v162_v37, %v159_v36 }
  0xc3   :  { %164 = vadd.xlane.f32.xlu0 %v163_v38 }
 0x150   :  { %v165_v8 = vpop.xlane.xlu0 %164 }
 0x151   :  { %v166_v39 = vrot.slane %v165_v8, 4 }
 0x153   :  { %v167_v9 = vadd.f32 %v166_v39, %v165_v8 }
 0x155   :  { %v168_v40 = vrot.slane %v167_v9, 2 }
 0x157   :  { %v169_v41 = vadd.f32 %v168_v40, %v167_v9 }
 0x159   :  { %v170_v42 = vrot.slane %v169_v41, 1 }
 0x15b   :  { %v171_v43 = vadd.f32 %v170_v42, %v169_v41 }
 0x15d   :  { %200 = vpush %v171_v43 }
 0x18e   :  { %s201_s0 = spop %200 }
 0x18f   :  { %s173_s1 = smul.f32 0.0625, %s201_s0 }
 0x191   :  { %176 = sst [smem:[#allocation2]] %s173_s1 }
 0x192   :  { %245 = shalt.err (!%p242_p2)
}
 0x193   :  { %s248_s4 = smov [#allocation2]  }
 0x194   :  { %184 = dma.smem_to_hbm %s248_s4, 16, %s359_s2, [#allocation3]  }
 0x195   :  { %246 = dma.done.wait [#allocation3], 16  }
 0x196   :  { %247 = vsyncadd [#allocation3], 4294967280 }
 0x197   :  { %188 = sfence }
 0x198   :  { %189 = vsyncpa [#allocation3], 1 }

// kernel: _lambda_.12
= control target key start
LH: loop header
LB: loop body
LE: loop exit
PB: predicated region body
PF: predicated region fallthrough
CT: control target
= control target key end

     0   :  { %v298_v0 = vmov 0   ;;  %vm138_vm0 = vcmask 130048   ;;  %s401_s1 = inlined_call_operand.vmem [shape: bf16[144,128], index: 1, kind: input, shape index: {}]   ;;  %s402_s0 = inlined_call_operand.vmem [shape: bf16[64,144], index: 0, kind: input, shape index: {}]   ;;  %s403_s2 = inlined_call_operand.vmem [shape: f32[1,128], index: 2, kind: input, shape index: {}]   ;;  %s404_s3 = inlined_call_operand.vmem [shape: f32[64,128], index: 3, kind: output, shape index: {}]  }
   0x1   :  { %151 = vmatprep.subr.bf16.mxu0 %v298_v0  ;;  %258 = vmatprep.subr.bf16.mxu1 %v298_v0  ;;  %v277_v1 = vld [vmem:[%s401_s1] sm:$0xff]   ;;  %v278_v2 = vld [vmem:[%s401_s1 + $0x8] sm:$0xff]   ;;  %v279_v3 = vld [vmem:[%s401_s1 + $0x10] sm:$0xff]  }
   0x2   :  { %152 = vmatpush1.bf16.msra.mxu0 %v277_v1  ;;  %267 = vmatpush1.bf16.msra.mxu1 %v277_v1  ;;  %v280_v4 = vld [vmem:[%s401_s1 + $0x18] sm:$0xff]   ;;  %v288_v5 = vld [vmem:[%s402_s0 + $0x4] ss:$8 sps:$4 sm:$0xff]   ;;  %v283_v9 = vld [vmem:[%s401_s1 + $0x30] sm:$0xff]  }
   0x3   :  { %153 = vmatprep.subr.bf16.mxu0 %v298_v0  ;;  %259 = vmatprep.subr.bf16.mxu1 %v298_v0  ;;  %v291_v6 = vld [vmem:[%s402_s0 + $0x24] ss:$8 sps:$4 sm:$0xff]   ;;  %v284_v10 = vld [vmem:[%s401_s1 + $0x38] sm:$0xff]   ;;  %v286_v12 = vld [vmem:[%s402_s0] ss:$8 sps:$4 sm:$0xff]  }
   0x4   :  { %254 = vmatprep.mubr.msk.bf16.mxu0 %vm138_vm0, %v288_v5  ;;  %256 = vmatprep.mubr.msk.bf16.mxu1 %vm138_vm0, %v291_v6  ;;  %v281_v7 = vld [vmem:[%s401_s1 + $0x20] sm:$0xff]   ;;  %v282_v8 = vld [vmem:[%s401_s1 + $0x28] sm:$0xff]   ;;  %v292_v14 = vld [vmem:[%s402_s0 + $0x14] ss:$8 sps:$4 sm:$0xff]  }
   0x5   :  { %v285_v11 = vld [vmem:[%s401_s1 + $0x40] sm:$0xff]   ;;  %v294_v15 = vld [vmem:[%s402_s0 + $0x34] ss:$8 sps:$4 sm:$0xff]   ;;  %v296_v16 = vld [vmem:[%s402_s0 + $0x10] ss:$8 sps:$4 sm:$0xff]  }
   0x6   :  { %154 = vmatpush1.bf16.msra.mxu0 %v278_v2  ;;  %268 = vmatpush1.bf16.msra.mxu1 %v278_v2  ;;  %v289_v13 = vld [vmem:[%s402_s0 + $0x20] ss:$8 sps:$4 sm:$0xff]   ;;  %v297_v17 = vld [vmem:[%s402_s0 + $0x30] ss:$8 sps:$4 sm:$0xff]  }
   0x7   :  { %155 = vmatprep.subr.bf16.mxu0 %v298_v0  ;;  %260 = vmatprep.subr.bf16.mxu1 %v298_v0  ;;  %v236_v18 = vld [vmem:[%s403_s2] ss:$0 sm:$0xff] }
   0xa   :  { %156 = vmatpush1.bf16.msra.mxu0 %v279_v3  ;;  %269 = vmatpush1.bf16.msra.mxu1 %v279_v3 }
   0xb   :  { %157 = vmatprep.subr.bf16.mxu0 %v298_v0  ;;  %261 = vmatprep.subr.bf16.mxu1 %v298_v0 }
   0xe   :  { %158 = vmatpush1.bf16.msra.mxu0 %v280_v4  ;;  %270 = vmatpush1.bf16.msra.mxu1 %v280_v4 }
   0xf   :  { %159 = vmatprep.subr.bf16.mxu0 %v298_v0  ;;  %262 = vmatprep.subr.bf16.mxu1 %v298_v0 }
  0x12   :  { %160 = vmatpush1.bf16.msra.mxu0 %v281_v7  ;;  %271 = vmatpush1.bf16.msra.mxu1 %v281_v7 }
  0x13   :  { %161 = vmatprep.subr.bf16.mxu0 %v298_v0  ;;  %263 = vmatprep.subr.bf16.mxu1 %v298_v0 }
  0x16   :  { %162 = vmatpush1.bf16.msra.mxu0 %v282_v8  ;;  %272 = vmatpush1.bf16.msra.mxu1 %v282_v8 }
  0x17   :  { %163 = vmatprep.subr.bf16.mxu0 %v298_v0  ;;  %264 = vmatprep.subr.bf16.mxu1 %v298_v0 }
  0x1a   :  { %164 = vmatpush1.bf16.msra.mxu0 %v283_v9  ;;  %273 = vmatpush1.bf16.msra.mxu1 %v283_v9 }
  0x1b   :  { %165 = vmatprep.subr.bf16.mxu0 %v298_v0  ;;  %265 = vmatprep.subr.bf16.mxu1 %v298_v0 }
  0x1e   :  { %166 = vmatpush1.bf16.msra.mxu0 %v284_v10  ;;  %274 = vmatpush1.bf16.msra.mxu1 %v284_v10 }
  0x1f   :  { %167 = vmatprep.subr.bf16.mxu0 %v298_v0  ;;  %266 = vmatprep.subr.bf16.mxu1 %v298_v0 }
  0x22   :  { %168 = vmatpush1.bf16.msra.mxu0 %v285_v11  ;;  %275 = vmatpush1.bf16.msra.mxu1 %v285_v11 }
  0x25   :  { %184 = vmatmul.mubr.bf16.vlgmr.msra.gmra.mrb[0].mxu0 %v286_v12  ;;  %200 = vmatmul.mubr.bf16.vlgmr.msra.gmra.mrb[0].mxu1 %v289_v13 }
  0x26   :  { %255 = vmatprep.mubr.msk.bf16.mxu0 %vm138_vm0, %v292_v14  ;;  %257 = vmatprep.mubr.msk.bf16.mxu1 %vm138_vm0, %v294_v15 }
  0x2d   :  { %192 = vmatmul.mubr.bf16.gmra.mrb[4].mxu0 %v296_v16  ;;  %208 = vmatmul.mubr.bf16.gmra.mrb[4].mxu1 %v297_v17 }
  0xf8   :  { %v185_v19 = vpop.f32.mrb[0].mxu0  ;;  %v201_v20 = vpop.f32.mrb[0].mxu1 }
  0xf9   :  { %v186_v21 = vadd.f32 %v236_v18, %v185_v19  ;;  %v202_v22 = vadd.f32 %v236_v18, %v201_v20  ;;  %v187_v23 = vpop.f32.mrb[1].mxu0  ;;  %v203_v24 = vpop.f32.mrb[1].mxu1 }
  0xfa   :  { %v188_v25 = vpop.f32.mrb[2].mxu0  ;;  %v204_v26 = vpop.f32.mrb[2].mxu1 }
  0xfb   :  { %v216_v27 = vmax.f32 %v186_v21, 0.0  ;;  %v220_v28 = vmax.f32 %v202_v22, 0.0  ;;  %v189_v29 = vadd.f32 %v236_v18, %v188_v25  ;;  %v205_v30 = vadd.f32 %v236_v18, %v204_v26  ;;  %v190_v31 = vpop.f32.mrb[3].mxu0  ;;  %v206_v32 = vpop.f32.mrb[3].mxu1 }
  0xfd   :  { %224 = vst [vmem:[%s404_s3] sm:$0xff] %v216_v27  ;;  %228 = vst [vmem:[%s404_s3 + $0x20] sm:$0xff] %v220_v28  ;;  %v217_v33 = vmax.f32 %v189_v29, 0.0  ;;  %v221_v34 = vmax.f32 %v205_v30, 0.0 }
  0xff   :  { %225 = vst [vmem:[%s404_s3 + $0x8] sm:$0xff] %v217_v33  ;;  %229 = vst [vmem:[%s404_s3 + $0x28] sm:$0xff] %v221_v34 }
 0x100   :  { %v193_v35 = vpop.f32.mrb[4].mxu0  ;;  %v209_v36 = vpop.f32.mrb[4].mxu1 }
 0x101   :  { %v194_v37 = vadd.f32 %v236_v18, %v193_v35  ;;  %v210_v38 = vadd.f32 %v236_v18, %v209_v36  ;;  %v195_v39 = vpop.f32.mrb[5].mxu0  ;;  %v211_v40 = vpop.f32.mrb[5].mxu1 }
 0x102   :  { %v196_v41 = vpop.f32.mrb[6].mxu0  ;;  %v212_v42 = vpop.f32.mrb[6].mxu1 }
 0x103   :  { %v218_v43 = vmax.f32 %v194_v37, 0.0  ;;  %v222_v44 = vmax.f32 %v210_v38, 0.0  ;;  %v197_v45 = vadd.f32 %v236_v18, %v196_v41  ;;  %v213_v46 = vadd.f32 %v236_v18, %v212_v42  ;;  %v198_v47 = vpop.f32.mrb[7].mxu0  ;;  %v214_v48 = vpop.f32.mrb[7].mxu1 }
 0x105   :  { %226 = vst [vmem:[%s404_s3 + $0x10] sm:$0xff] %v218_v43  ;;  %230 = vst [vmem:[%s404_s3 + $0x30] sm:$0xff] %v222_v44  ;;  %v219_v49 = vmax.f32 %v197_v45, 0.0  ;;  %v223_v50 = vmax.f32 %v213_v46, 0.0 }
 0x107   :  { %227 = vst [vmem:[%s404_s3 + $0x18] sm:$0xff] %v219_v49  ;;  %231 = vst [vmem:[%s404_s3 + $0x38] sm:$0xff] %v223_v50 }

// kernel: _lambda_.13
= control target key start
LH: loop header
LB: loop body
LE: loop exit
PB: predicated region body
PF: predicated region fallthrough
CT: control target
= control target key end

     0   :  { %vm242_vm0 = vcmask 261120   ;;  %s689_s1 = inlined_call_operand.vmem [shape: bf16[288,128], index: 1, kind: input, shape index: {}]   ;;  %s690_s0 = inlined_call_operand.vmem [shape: bf16[64,288], index: 0, kind: input, shape index: {}]   ;;  %s691_s2 = inlined_call_operand.vmem [shape: f32[1,128], index: 2, kind: input, shape index: {}]   ;;  %s692_s3 = inlined_call_operand.vmem [shape: f32[64,128], index: 3, kind: output, shape index: {}]  }
   0x1   :  { %v514_v0 = vld [vmem:[%s689_s1 + $0x40] sm:$0xff]   ;;  %v516_v2 = vld [vmem:[%s689_s1 + $0x48] sm:$0xff]   ;;  %v518_v4 = vld [vmem:[%s689_s1 + $0x50] sm:$0xff]  }
   0x2   :  { %v515_v1 = vld [vmem:[%s689_s1] sm:$0xff]   ;;  %440 = vmatprep.subr.bf16.mxu0 %v514_v0  ;;  %498 = vmatprep.subr.bf16.mxu1 %v514_v0  ;;  %v517_v3 = vld [vmem:[%s689_s1 + $0x8] sm:$0xff]   ;;  %v519_v5 = vld [vmem:[%s689_s1 + $0x10] sm:$0xff]  }
   0x3   :  { %441 = vmatpush3.bf16.msra.mxu0 %v515_v1  ;;  %506 = vmatpush3.bf16.msra.mxu1 %v515_v1  ;;  %v520_v6 = vld [vmem:[%s689_s1 + $0x58] sm:$0xff]   ;;  %v522_v8 = vld [vmem:[%s689_s1 + $0x60] sm:$0xff]   ;;  %v524_v10 = vld [vmem:[%s689_s1 + $0x68] sm:$0xff]  }
   0x4   :  { %442 = vmatprep.subr.bf16.mxu0 %v516_v2  ;;  %499 = vmatprep.subr.bf16.mxu1 %v516_v2  ;;  %v521_v7 = vld [vmem:[%s689_s1 + $0x18] sm:$0xff]   ;;  %v523_v9 = vld [vmem:[%s689_s1 + $0x20] sm:$0xff]   ;;  %v525_v13 = vld [vmem:[%s689_s1 + $0x28] sm:$0xff]  }
   0x5   :  { %v532_v11 = vld [vmem:[%s690_s0 + $0x4] ss:$12 sps:$4 sm:$0xff]   ;;  %v535_v12 = vld [vmem:[%s690_s0 + $0x4c] ss:$12 sps:$4 sm:$0xff]   ;;  %v533_v20 = vld [vmem:[%s690_s0 + $0x48] ss:$12 sps:$4 sm:$0xff]  }
   0x6   :  { %v526_v14 = vld [vmem:[%s689_s1 + $0x70] sm:$0xff]   ;;  %287 = vmatprep.mubr.bf16.mxu0 %v532_v11  ;;  %311 = vmatprep.mubr.bf16.mxu1 %v535_v12  ;;  %v528_v16 = vld [vmem:[%s689_s1 + $0x78] sm:$0xff]   ;;  %v536_v18 = vld [vmem:[%s689_s1 + $0x80] sm:$0xff]  }
   0x7   :  { %443 = vmatpush3.bf16.msra.mxu0 %v517_v3  ;;  %507 = vmatpush3.bf16.msra.mxu1 %v517_v3  ;;  %v527_v15 = vld [vmem:[%s689_s1 + $0x30] sm:$0xff]   ;;  %v529_v17 = vld [vmem:[%s689_s1 + $0x38] sm:$0xff]   ;;  %v530_v19 = vld [vmem:[%s690_s0] ss:$12 sps:$4 sm:$0xff]  }
   0x8   :  { %444 = vmatprep.subr.bf16.mxu0 %v518_v4  ;;  %500 = vmatprep.subr.bf16.mxu1 %v518_v4  ;;  %v538_v21 = vld [vmem:[%s690_s0 + $0x1c] ss:$12 sps:$4 sm:$0xff]   ;;  %v541_v24 = vld [vmem:[%s690_s0 + $0x18] ss:$12 sps:$4 sm:$0xff]   ;;  %v542_v25 = vld [vmem:[%s690_s0 + $0x20] ss:$12 sps:$4 sm:$0xff]  }
   0x9   :  { %v537_v22 = vld [vmem:[%s689_s1 + $0x88] sm:$0xff]   ;;  %v543_v26 = vld [vmem:[%s690_s0 + $0x34] ss:$12 sps:$4 sm:$0xff]   ;;  %v545_v27 = vld [vmem:[%s690_s0 + $0x38] ss:$12 sps:$4 sm:$0xff]  }
   0xa   :  { %v540_v23 = vld [vmem:[%s690_s0 + $0x8] ss:$12 sps:$4 sm:$0xff]   ;;  %v546_v28 = vld [vmem:[%s690_s0 + $0x30] ss:$12 sps:$4 sm:$0xff]   ;;  %v405_v42 = vld [vmem:[%s691_s2] ss:$0 sm:$0xff] }
   0xb   :  { %445 = vmatpush3.bf16.msra.mxu0 %v519_v5  ;;  %508 = vmatpush3.bf16.msra.mxu1 %v519_v5  ;;  %v547_v29 = vld [vmem:[%s690_s0 + $0x50] ss:$12 sps:$4 sm:$0xff]  }
   0xc   :  { %446 = vmatprep.subr.bf16.mxu0 %v520_v6  ;;  %501 = vmatprep.subr.bf16.mxu1 %v520_v6 }
   0xf   :  { %447 = vmatpush3.bf16.msra.mxu0 %v521_v7  ;;  %509 = vmatpush3.bf16.msra.mxu1 %v521_v7 }
  0x10   :  { %448 = vmatprep.subr.bf16.mxu0 %v522_v8  ;;  %502 = vmatprep.subr.bf16.mxu1 %v522_v8 }
  0x13   :  { %449 = vmatpush3.bf16.msra.mxu0 %v523_v9  ;;  %510 = vmatpush3.bf16.msra.mxu1 %v523_v9 }
  0x14   :  { %450 = vmatprep.subr.bf16.mxu0 %v524_v10  ;;  %503 = vmatprep.subr.bf16.mxu1 %v524_v10 }
  0x17   :  { %451 = vmatpush3.bf16.msra.mxu0 %v525_v13  ;;  %511 = vmatpush3.bf16.msra.mxu1 %v525_v13 }
  0x18   :  { %452 = vmatprep.subr.bf16.mxu0 %v526_v14  ;;  %504 = vmatprep.subr.bf16.mxu1 %v526_v14 }
  0x1b   :  { %453 = vmatpush3.bf16.msra.mxu0 %v527_v15  ;;  %512 = vmatpush3.bf16.msra.mxu1 %v527_v15 }
  0x1c   :  { %454 = vmatprep.subr.bf16.mxu0 %v528_v16  ;;  %505 = vmatprep.subr.bf16.mxu1 %v528_v16 }
  0x1f   :  { %455 = vmatpush3.bf16.msra.mxu0 %v529_v17  ;;  %513 = vmatpush3.bf16.msra.mxu1 %v529_v17 }
  0x20   :  { %486 = vmatprep.subr.bf16.mxu1 %v536_v18 }
  0x22   :  { %288 = vmatmul.mubr.bf16.vlgmr.msra.gmra.mrb[0].mxu0 %v530_v19  ;;  %312 = vmatmul.mubr.bf16.vlgmr.msra.gmra.mrb[0].mxu1 %v533_v20 }
  0x23   :  { %487 = vmatpush3.bf16.msra.mxu1 %v536_v18  ;;  %295 = vmatprep.mubr.bf16.mxu0 %v538_v21 }
  0x24   :  { %488 = vmatprep.subr.bf16.mxu1 %v537_v22  ;;  %490 = vmatprep.mubr.msk.bf16.mxu1 %vm242_vm0, %v540_v23 }
  0x27   :  { %489 = vmatpush3.bf16.msra.mxu1 %v537_v22 }
  0x2a   :  { %296 = vmatmul.mubr.bf16.gmra.mrb[4].mxu0 %v541_v24  ;;  %491 = vmatmul.mubr.msk.bf16.vlgmr.msra.gmra.mrb[4].mxu1 %vm242_vm0, %v542_v25 }
  0x2b   :  { %303 = vmatprep.mubr.bf16.mxu0 %v543_v26  ;;  %494 = vmatprep.mubr.msk.bf16.mxu1 %vm242_vm0, %v545_v27 }
  0x32   :  { %304 = vmatmul.mubr.bf16.gmra.mrb[8].mxu0 %v546_v28  ;;  %495 = vmatmul.mubr.msk.bf16.gmra.mrb[8].mxu1 %vm242_vm0, %v547_v29 }
  0xf5   :  { %v456_v30 = vpop.f32.mrb[0].mxu0  ;;  %v474_v31 = vpop.f32.mrb[0].mxu1 }
  0xf6   :  { %v457_v32 = vpop.f32.mrb[1].mxu0  ;;  %v475_v33 = vpop.f32.mrb[1].mxu1 }
  0xf7   :  { %v458_v34 = vadd.f32 %v457_v32, %v456_v30  ;;  %v459_v35 = vpop.f32.mrb[2].mxu0  ;;  %v476_v36 = vadd.f32 %v475_v33, %v474_v31  ;;  %v477_v37 = vpop.f32.mrb[2].mxu1 }
  0xf8   :  { %v460_v38 = vpop.f32.mrb[3].mxu0  ;;  %v478_v39 = vpop.f32.mrb[3].mxu1 }
  0xf9   :  { %v461_v40 = vadd.f32 %v460_v38, %v459_v35  ;;  %v479_v41 = vadd.f32 %v478_v39, %v477_v37  ;;  %v290_v45 = vadd.f32 %v458_v34, %v405_v42  ;;  %v314_v62 = vadd.f32 %v476_v36, %v405_v42 }
  0xfb   :  { %v293_v52 = vadd.f32 %v461_v40, %v405_v42  ;;  %v317_v6 = vadd.f32 %v479_v41, %v405_v42 }
  0xfd   :  { %v462_v43 = vpop.f32.mrb[4].mxu0  ;;  %v492_v44 = vpop.f32.mrb[4].mxu1 }
  0xfe   :  { %v463_v46 = vpop.f32.mrb[5].mxu0  ;;  %v354_v47 = vpop.f32.mrb[5].mxu1 }
  0xff   :  { %v464_v48 = vadd.f32 %v463_v46, %v462_v43  ;;  %v355_v49 = vadd.f32 %v354_v47, %v290_v45  ;;  %v465_v50 = vpop.f32.mrb[6].mxu0  ;;  %v493_v51 = vpop.f32.mrb[6].mxu1 }
 0x100   :  { %v466_v53 = vpop.f32.mrb[7].mxu0  ;;  %v357_v54 = vpop.f32.mrb[7].mxu1 }
 0x101   :  { %v298_v55 = vadd.f32 %v464_v48, %v405_v42  ;;  %v385_v56 = vmax.f32 %v355_v49, 0.0  ;;  %v467_v57 = vadd.f32 %v466_v53, %v465_v50  ;;  %v358_v58 = vadd.f32 %v357_v54, %v293_v52 }
 0x103   :  { %v363_v59 = vadd.f32 %v492_v44, %v298_v55  ;;  %393 = vst [vmem:[%s692_s3] sm:$0xff] %v385_v56  ;;  %v301_v60 = vadd.f32 %v467_v57, %v405_v42  ;;  %v386_v61 = vmax.f32 %v358_v58, 0.0 }
 0x105   :  { %v387_v63 = vmax.f32 %v363_v59, 0.0  ;;  %v366_v0 = vadd.f32 %v493_v51, %v301_v60  ;;  %394 = vst [vmem:[%s692_s3 + $0x8] sm:$0xff] %v386_v61  ;;  %v468_v1 = vpop.f32.mrb[8].mxu0  ;;  %v496_v2 = vpop.f32.mrb[8].mxu1 }
 0x106   :  { %v379_v3 = vadd.f32 %v496_v2, %v314_v62  ;;  %v469_v4 = vpop.f32.mrb[9].mxu0  ;;  %v370_v5 = vpop.f32.mrb[9].mxu1 }
 0x107   :  { %395 = vst [vmem:[%s692_s3 + $0x10] sm:$0xff] %v387_v63  ;;  %v388_v7 = vmax.f32 %v366_v0, 0.0  ;;  %v470_v8 = vadd.f32 %v469_v4, %v468_v1  ;;  %v471_v9 = vpop.f32.mrb[10].mxu0  ;;  %v497_v10 = vpop.f32.mrb[10].mxu1 }
 0x108   :  { %v391_v11 = vmax.f32 %v379_v3, 0.0  ;;  %v382_v12 = vadd.f32 %v497_v10, %v317_v6  ;;  %v472_v13 = vpop.f32.mrb[11].mxu0  ;;  %v373_v14 = vpop.f32.mrb[11].mxu1 }
 0x109   :  { %396 = vst [vmem:[%s692_s3 + $0x18] sm:$0xff] %v388_v7  ;;  %v306_v15 = vadd.f32 %v470_v8, %v405_v42  ;;  %v473_v16 = vadd.f32 %v472_v13, %v471_v9 }
 0x10a   :  { %399 = vst [vmem:[%s692_s3 + $0x30] sm:$0xff] %v391_v11  ;;  %v392_v17 = vmax.f32 %v382_v12, 0.0 }
 0x10b   :  { %v371_v18 = vadd.f32 %v370_v5, %v306_v15  ;;  %v309_v19 = vadd.f32 %v473_v16, %v405_v42 }
 0x10c   :  { %400 = vst [vmem:[%s692_s3 + $0x38] sm:$0xff] %v392_v17 }
 0x10d   :  { %v389_v20 = vmax.f32 %v371_v18, 0.0  ;;  %v374_v21 = vadd.f32 %v373_v14, %v309_v19 }
 0x10f   :  { %397 = vst [vmem:[%s692_s3 + $0x20] sm:$0xff] %v389_v20  ;;  %v390_v22 = vmax.f32 %v374_v21, 0.0 }
 0x111   :  { %398 = vst [vmem:[%s692_s3 + $0x28] sm:$0xff] %v390_v22 }

// kernel: _lambda_.19
= control target key start
LH: loop header
LB: loop body
LE: loop exit
PB: predicated region body
PF: predicated region fallthrough
CT: control target
= control target key end

     0   :  { %s157_s0 = inlined_call_operand.vmem [shape: f32[16,128], index: 0, kind: input, shape index: {}, may-alias: {0,1}]   ;;  %s158_s1 = inlined_call_operand.vmem [shape: f32[16,128], index: 1, kind: input, shape index: {}, may-alias: {0,1}]   ;;  %s159_s2 = inlined_call_operand.hbm [shape: f32[1,1], index: 2, kind: output, shape index: {}]  }
   0x1   :  { %v35_v0 = vld [vmem:[%s157_s0] sm:$0xff]  ;;  %v98_v1 = vld [vmem:[%s158_s1 + $0x8] sm:$0xff] }
   0x2   :  { %7 = vsyncpa [#allocation3], 0  ;;  %v37_v2 = vmul.f32 %v35_v0, %v35_v0  ;;  %v49_v3 = vmul.f32 %v98_v1, %v98_v1  ;;  %s111_s15 = scalar_lea.hbm %s159_s2, 16 }
   0x3   :  { %p112_p0 = scmp.ne.s32.totalorder %s159_s2, %s111_s15  ;;  %p115_p1 = scmp.lt.u32.totalorder %s111_s15, %s159_s2 }
   0x4   :  { %38 = vadd.xlane.f32.xlu0 %v37_v2 }
   0x5   :  { %p117_p2 = pnand %p115_p1, %p112_p0 }
   0x8   :  { %50 = vadd.xlane.f32.xlu0 %v49_v3 }
  0x91   :  { %v39_v4 = vpop.xlane.xlu0 %38 }
  0x92   :  { %103 = vrsqrt.f32 %v39_v4  ;;  %vm42_vm0 = vcmp.eq.f32.partialorder %v39_v4, inf  ;;  %v45_v8 = vand.u32 2147483648, %v39_v4  ;;  %vm44_vm1 = vcmp.eq.f32.partialorder %v39_v4, 0.0 }
  0x95   :  { %v51_v5 = vpop.xlane.xlu0 %50 }
  0x96   :  { %105 = vrsqrt.f32 %v51_v5  ;;  %vm54_vm2 = vcmp.eq.f32.partialorder %v51_v5, inf  ;;  %v57_v14 = vand.u32 2147483648, %v51_v5  ;;  %vm56_vm3 = vcmp.eq.f32.partialorder %v51_v5, 0.0 }
  0x9c   :  { %v104_v6 = vpop.eup %103 }
  0x9d   :  { %v41_v7 = vmul.f32 %v104_v6, %v39_v4 }
  0x9f   :  { %v43_v9 = vsel %vm42_vm0, %v39_v4, %v41_v7 }
  0xa0   :  { %v106_v10 = vpop.eup %105  ;;  %v46_v11 = vsel %vm44_vm1, %v45_v8, %v43_v9 }
  0xa1   :  { %v53_v12 = vmul.f32 %v106_v10, %v51_v5  ;;  %v47_v13 = vadd.f32 1e-10, %v46_v11 }
  0xa3   :  { %v55_v15 = vsel %vm54_vm2, %v51_v5, %v53_v12  ;;  %107 = vrcp.f32 %v47_v13 }
  0xa4   :  { %v58_v16 = vsel %vm56_vm3, %v57_v14, %v55_v15 }
  0xa5   :  { %v59_v17 = vadd.f32 1e-10, %v58_v16 }
  0xa7   :  { %109 = vrcp.f32 %v59_v17 }
  0xad   :  { %v108_v18 = vpop.eup %107 }
  0xae   :  { %v61_v20 = vmul.f32 %v108_v18, %v35_v0 }
  0xb1   :  { %v110_v19 = vpop.eup %109 }
  0xb2   :  { %v62_v21 = vmul.f32 %v110_v19, %v98_v1 }
  0xb4   :  { %v63_v22 = vsub.f32 %v61_v20, %v62_v21 }
  0xb6   :  { %v64_v23 = vmul.f32 %v63_v22, %v63_v22 }
  0xb8   :  { %66 = vadd.xlane.f32.xlu1 %v64_v23 }
 0x145   :  { %v67_v24 = vpop.xlane.xlu1 %66 }
 0x146   :  { %v68_v25 = vrot.slane %v67_v24, 4 }
 0x148   :  { %v69_v26 = vadd.f32 %v68_v25, %v67_v24 }
 0x14a   :  { %v70_v27 = vrot.slane %v69_v26, 2 }
 0x14c   :  { %v71_v28 = vadd.f32 %v70_v27, %v69_v26 }
 0x14e   :  { %v72_v29 = vrot.slane %v71_v28, 1 }
 0x150   :  { %v73_v30 = vadd.f32 %v72_v29, %v71_v28 }
 0x152   :  { %99 = vpush %v73_v30 }
 0x183   :  { %s100_s0 = spop %99 }
 0x184   :  { %s75_s1 = smul.f32 0.25, %s100_s0 }
 0x186   :  { %78 = sst [smem:[#allocation2]] %s75_s1 }
 0x187   :  { %120 = shalt.err (!%p117_p2)
}
 0x188   :  { %s123_s20 = smov [#allocation2]  }
 0x189   :  { %86 = dma.smem_to_hbm %s123_s20, 16, %s159_s2, [#allocation3]  }
 0x18a   :  { %121 = dma.done.wait [#allocation3], 16  }
 0x18b   :  { %122 = vsyncadd [#allocation3], 4294967280 }
 0x18c   :  { %90 = sfence }
 0x18d   :  { %91 = vsyncpa [#allocation3], 1 }

// kernel: _lambda_.14
= control target key start
LH: loop header
LB: loop body
LE: loop exit
PB: predicated region body
PF: predicated region fallthrough
CT: control target
= control target key end

     0   :  { %v359_v1 = vmov 0.0   ;;  %vm360_vm0 = vmmov 0   ;;  %vm185_vm1 = vcmask 261120   ;;  %s453_s1 = inlined_call_operand.vmem [shape: bf16[288,128], index: 1, kind: input, shape index: {}]   ;;  %s454_s0 = inlined_call_operand.vmem [shape: bf16[16,288], index: 0, kind: input, shape index: {}]   ;;  %s455_s2 = inlined_call_operand.vmem [shape: f32[1,128], index: 2, kind: input, shape index: {}]   ;;  %s456_s3 = inlined_call_operand.vmem [shape: f32[16,128], index: 3, kind: output, shape index: {}]  }
   0x1   :  { %v337_v0 = vld [vmem:[%s453_s1 + $0x40] sm:$0xff]   ;;  %327 = vmatprep.subr.bf16.mxu1 %v359_v1  ;;  %331 = vmatprep.mubr.msk.bf16.mxu1 %vm360_vm0, %v359_v1  ;;  %v339_v3 = vld [vmem:[%s453_s1 + $0x48] sm:$0xff]   ;;  %v341_v5 = vld [vmem:[%s453_s1 + $0x50] sm:$0xff]  }
   0x2   :  { %v338_v2 = vld [vmem:[%s453_s1] sm:$0xff]   ;;  %302 = vmatprep.subr.bf16.mxu0 %v337_v0  ;;  %v340_v4 = vld [vmem:[%s453_s1 + $0x8] sm:$0xff]   ;;  %v342_v6 = vld [vmem:[%s453_s1 + $0x10] sm:$0xff]  }
   0x3   :  { %303 = vmatpush3.bf16.msra.mxu0 %v338_v2  ;;  %v343_v7 = vld [vmem:[%s453_s1 + $0x58] sm:$0xff]   ;;  %v345_v9 = vld [vmem:[%s453_s1 + $0x60] sm:$0xff]   ;;  %v347_v12 = vld [vmem:[%s453_s1 + $0x68] sm:$0xff]  }
   0x4   :  { %304 = vmatprep.subr.bf16.mxu0 %v339_v3  ;;  %v344_v8 = vld [vmem:[%s453_s1 + $0x18] sm:$0xff]   ;;  %v351_v10 = vld [vmem:[%s453_s1 + $0x80] sm:$0xff]   ;;  %v348_v13 = vld [vmem:[%s453_s1 + $0x28] sm:$0xff]  }
   0x5   :  { %v346_v11 = vld [vmem:[%s453_s1 + $0x20] sm:$0xff]   ;;  %328 = vmatpush3.bf16.msra.mxu1 %v351_v10  ;;  %v357_v15 = vld [vmem:[%s453_s1 + $0x88] sm:$0xff]   ;;  %v349_v16 = vld [vmem:[%s453_s1 + $0x70] sm:$0xff]  }
   0x6   :  { %329 = vmatprep.subr.bf16.mxu1 %v359_v1  ;;  %v356_v14 = vld [vmem:[%s454_s0 + $0x4] ss:$12 sps:$4 sm:$0xff]   ;;  %v358_v17 = vld [vmem:[%s454_s0 + $0x8] ss:$12 sps:$4 sm:$0xff]   ;;  %v352_v19 = vld [vmem:[%s453_s1 + $0x78] sm:$0xff]  }
   0x7   :  { %305 = vmatpush3.bf16.msra.mxu0 %v340_v4  ;;  %221 = vmatprep.mubr.bf16.mxu0 %v356_v14  ;;  %v350_v18 = vld [vmem:[%s453_s1 + $0x30] sm:$0xff]   ;;  %v353_v20 = vld [vmem:[%s453_s1 + $0x38] sm:$0xff]   ;;  %v354_v21 = vld [vmem:[%s454_s0] ss:$12 sps:$4 sm:$0xff]  }
   0x8   :  { %306 = vmatprep.subr.bf16.mxu0 %v341_v5  ;;  %v279_v28 = vld [vmem:[%s455_s2] ss:$0 sm:$0xff] }
   0x9   :  { %330 = vmatpush3.bf16.msra.mxu1 %v357_v15 }
   0xb   :  { %307 = vmatpush3.bf16.msra.mxu0 %v342_v6 }
   0xc   :  { %308 = vmatprep.subr.bf16.mxu0 %v343_v7  ;;  %332 = vmatmul.mubr.msk.bf16.vlgmr.msra.gmra.mrb[0].mxu1 %vm185_vm1, %v358_v17 }
   0xf   :  { %309 = vmatpush3.bf16.msra.mxu0 %v344_v8 }
  0x10   :  { %310 = vmatprep.subr.bf16.mxu0 %v345_v9 }
  0x13   :  { %311 = vmatpush3.bf16.msra.mxu0 %v346_v11 }
  0x14   :  { %312 = vmatprep.subr.bf16.mxu0 %v347_v12 }
  0x17   :  { %313 = vmatpush3.bf16.msra.mxu0 %v348_v13 }
  0x18   :  { %314 = vmatprep.subr.bf16.mxu0 %v349_v16 }
  0x1b   :  { %315 = vmatpush3.bf16.msra.mxu0 %v350_v18 }
  0x1c   :  { %316 = vmatprep.subr.bf16.mxu0 %v352_v19 }
  0x1f   :  { %317 = vmatpush3.bf16.msra.mxu0 %v353_v20 }
  0x22   :  { %222 = vmatmul.mubr.bf16.vlgmr.msra.gmra.mrb[0].mxu0 %v354_v21 }
  0xdf   :  { %v264_v22 = vpop.f32.mrb[0].mxu1 }
  0xe0   :  { %v333_v23 = vpop.f32.mrb[1].mxu1 }
  0xe1   :  { %v267_v24 = vpop.f32.mrb[2].mxu1 }
  0xe2   :  { %v334_v25 = vpop.f32.mrb[3].mxu1 }
  0xf5   :  { %v318_v26 = vpop.f32.mrb[0].mxu0 }
  0xf6   :  { %v319_v27 = vpop.f32.mrb[1].mxu0 }
  0xf7   :  { %v320_v29 = vadd.f32 %v319_v27, %v318_v26  ;;  %v321_v30 = vpop.f32.mrb[2].mxu0 }
  0xf8   :  { %v322_v31 = vpop.f32.mrb[3].mxu0 }
  0xf9   :  { %v224_v32 = vadd.f32 %v320_v29, %v279_v28  ;;  %v323_v33 = vadd.f32 %v322_v31, %v321_v30 }
  0xfb   :  { %v265_v34 = vadd.f32 %v264_v22, %v224_v32  ;;  %v227_v35 = vadd.f32 %v323_v33, %v279_v28 }
  0xfd   :  { %v271_v36 = vmax.f32 %v265_v34, 0.0  ;;  %v268_v37 = vadd.f32 %v267_v24, %v227_v35 }
  0xff   :  { %273 = vst [vmem:[%s456_s3] sm:$0xff] %v271_v36  ;;  %v272_v38 = vmax.f32 %v268_v37, 0.0 }
 0x101   :  { %274 = vst [vmem:[%s456_s3 + $0x8] sm:$0xff] %v272_v38 }

</bundles_post_ra>
